<compile_context>
chip_gen: v7x
topology: tpu7x:2x2x1
jax: 0.10.0
libtpu: 0.0.40
codegen_flags: <defaults>
</compile_context>

<pallas_src>
import functools

import jax
import jax.numpy as jnp
from jax.experimental import pallas as pl
from jax.experimental.pallas import tpu as pltpu

LANE = 128


def _round_up(x, m):
    return (x + m - 1) // m * m


# ------------------------------ fused kernel --------------------------------

def make_fused_kernel(h, w, c_in, b_blk, n_cls):
    hw = h * w
    pad_rows = w + 8   # zero rows above/below each flattened image (dy halo)

    def kernel(x_ref, mean_ref, w_conv_ref, b_conv_ref, w_fc_ref, b_fc_ref,
               logits_ref, probs_ref):
        # ---- transforms: subtract mean (1/std folded into conv weights) -----
        x = x_ref[...]                                        # (B, HW, C_in) f32
        xn = x - mean_ref[...]

        # Per-image zero row padding: dy shifts stay inside each image's slab
        # (no bleed across images of the batch block).
        zpad = jnp.zeros((b_blk, pad_rows, c_in), jnp.float32)
        xp = jnp.concatenate([zpad, xn, zpad], axis=1)        # (B, HW+2p, C_in)

        # In-kernel edge masks for the dx = -1 / +1 taps (replaces HBM input).
        col = jax.lax.broadcasted_iota(jnp.int32, (b_blk, hw, c_in), 1) % w
        not_left = col != 0
        not_right = col != (w - 1)

        # ---- 3x3 conv as ONE im2col matmul (K = 9*C_in) ----------------------
        taps = []
        for dy in range(3):
            for dx in range(3):
                start = pad_rows + (dy - 1) * w + (dx - 1)
                t = xp[:, start:start + hw, :]                # (B, HW, C_in)
                if dx == 0:
                    t = jnp.where(not_left, t, 0.0)           # zero-pad x == 0
                elif dx == 2:
                    t = jnp.where(not_right, t, 0.0)          # zero-pad x == W-1
                taps.append(t)
        lhs = jnp.concatenate(taps, axis=-1)                  # (B, HW, 9*C_in)
        lhs = lhs.reshape(b_blk * hw, 9 * c_in).astype(jnp.bfloat16)  # one cast

        acc = jnp.dot(lhs, w_conv_ref[...],
                      preferred_element_type=jnp.float32)     # (B*HW, C_out_pad)
        act = jnp.maximum(acc + b_conv_ref[...], 0.0)         # ReLU, f32, VMEM only

        # ---- global average pool + FC head + masked exact softmax ------------
        pooled = jnp.concatenate(
            [jnp.sum(act[b * hw:(b + 1) * hw, :], axis=0, keepdims=True)
             for b in range(b_blk)], axis=0) * (1.0 / hw)     # (B, C_out_pad)

        logits = jnp.dot(pooled.astype(jnp.bfloat16), w_fc_ref[...],
                         preferred_element_type=jnp.float32) + b_fc_ref[...]

        cls = jax.lax.broadcasted_iota(jnp.int32, logits.shape, 1)
        valid = cls < n_cls                                   # mask padded classes
        m = jnp.max(jnp.where(valid, logits, -jnp.inf), axis=-1, keepdims=True)
        e = jnp.where(valid, jnp.exp(logits - m), 0.0)
        probs = e / jnp.sum(e, axis=-1, keepdims=True)        # exact normalization

        logits_ref[0] = logits
        probs_ref[0] = probs

    return kernel


# ------------------------------ wrapper --------------------------------------

def inference_forward(x_nchw, params, *, n_cls, batch_block=None):
    """Equivalent of Inference.forward(sample) -> Dict[str, Tensor]."""
    n, c_in, h, w = x_nchw.shape
    hw = h * w
    c_out_pad = params["w_conv"].shape[-1]
    n_cls_pad = params["w_fc"].shape[-1]

    if batch_block is None:
        # Keep >= 2 grid steps for v7x's two TensorCores while blocking up to 8
        # images per step to raise the im2col matmul's M and amortize per-step
        # grid overhead.
        batch_block = max(1, min(8, (n + 1) // 2))
    n_grid = pl.cdiv(n, batch_block)
    n_pad = n_grid * batch_block

    # NCHW -> (N, H*W, C): channels on the TPU lane axis; pad batch to the grid.
    x_rows = jnp.transpose(x_nchw, (0, 2, 3, 1)).reshape(n, hw, c_in)
    if n_pad != n:
        x_rows = jnp.pad(x_rows, ((0, n_pad - n), (0, 0), (0, 0)))

    kernel = make_fused_kernel(h, w, c_in, batch_block, n_cls)

    grid_spec = pltpu.PrefetchScalarGridSpec(
        num_scalar_prefetch=0,
        grid=(n_grid,),
        in_specs=[
            pl.BlockSpec((batch_block, hw, c_in), lambda i: (i, 0, 0)),   # images
            pl.BlockSpec((1, c_in), lambda i: (0, 0)),                    # mean
            pl.BlockSpec((9 * c_in, c_out_pad), lambda i: (0, 0)),        # conv W
            pl.BlockSpec((1, c_out_pad), lambda i: (0, 0)),               # conv b
            pl.BlockSpec((c_out_pad, n_cls_pad), lambda i: (0, 0)),       # fc W
            pl.BlockSpec((1, n_cls_pad), lambda i: (0, 0)),               # fc b
        ],
        out_specs=[
            pl.BlockSpec((1, batch_block, n_cls_pad), lambda i: (i, 0, 0)),
            pl.BlockSpec((1, batch_block, n_cls_pad), lambda i: (i, 0, 0)),
        ],
    )

    logits_p, probs_p = pl.pallas_call(
        kernel,
        out_shape=(jax.ShapeDtypeStruct((n_grid, batch_block, n_cls_pad), jnp.float32),
                   jax.ShapeDtypeStruct((n_grid, batch_block, n_cls_pad), jnp.float32)),
        grid_spec=grid_spec,
        compiler_params=pltpu.CompilerParams(
            dimension_semantics=("parallel",)),     # shard batch over TCs on v7x
    )(x_rows, params["mean"], params["w_conv"], params["b_conv"],
      params["w_fc"], params["b_fc"])

    logits = logits_p.reshape(n_pad, n_cls_pad)[:n, :n_cls]
    probs = probs_p.reshape(n_pad, n_cls_pad)[:n, :n_cls]
    preds = jnp.argmax(logits, axis=-1)             # cheap glue
    return {"logits": logits, "probs": probs, "preds": preds}


# ------------------------------ main ------------------------------------------

if __name__ == "__main__":
    N, C_IN, H, W = 2, 4, 16, 16
    C_OUT, N_CLS = 8, 10
    C_OUT_PAD = _round_up(C_OUT, LANE)       # 128: lane-dense MXU / stores
    N_CLS_PAD = _round_up(N_CLS, LANE)       # 128

    key = jax.random.PRNGKey(0)
    k_x, k_wc, k_bc, k_wf, k_bf = jax.random.split(key, 5)

    x = jax.random.normal(k_x, (N, C_IN, H, W), dtype=jnp.float32)   # NCHW input

    mean = jnp.full((1, C_IN), 0.1, jnp.float32)
    std = jnp.full((1, C_IN), 1.5, jnp.float32)
    inv_std = 1.0 / std

    # Synthetic model weights (stand-in for the hydra-instantiated checkpoint).
    w_conv_f32 = jax.random.normal(k_wc, (3, 3, C_IN, C_OUT), jnp.float32) * 0.1
    b_conv = jax.random.normal(k_bc, (1, C_OUT), jnp.float32) * 0.1
    w_fc = jax.random.normal(k_wf, (C_OUT, N_CLS), jnp.float32) * 0.1
    b_fc = jax.random.normal(k_bf, (1, N_CLS), jnp.float32) * 0.1

    # Kernel-side weights: fold 1/std into the conv weight, lay it out as the
    # (9*C_in, C_out_pad) im2col matrix, pad channel/class dims to 128 lanes,
    # and quantize the MXU operands to bf16.
    w_fold = (w_conv_f32 * inv_std.reshape(1, 1, C_IN, 1)).astype(jnp.bfloat16)
    w_conv_pad = jnp.zeros((3, 3, C_IN, C_OUT_PAD), jnp.bfloat16)
    w_conv_pad = w_conv_pad.at[..., :C_OUT].set(w_fold).reshape(9 * C_IN, C_OUT_PAD)
    b_conv_pad = jnp.zeros((1, C_OUT_PAD), jnp.float32).at[:, :C_OUT].set(b_conv)
    w_fc_pad = jnp.zeros((C_OUT_PAD, N_CLS_PAD), jnp.bfloat16)
    w_fc_pad = w_fc_pad.at[:C_OUT, :N_CLS].set(w_fc.astype(jnp.bfloat16))
    b_fc_pad = jnp.zeros((1, N_CLS_PAD), jnp.float32).at[:, :N_CLS].set(b_fc)

    params = {"mean": mean, "w_conv": w_conv_pad, "b_conv": b_conv_pad,
              "w_fc": w_fc_pad, "b_fc": b_fc_pad}

    fwd = jax.jit(functools.partial(inference_forward, n_cls=N_CLS))
    out = fwd(x, params)
    jax.block_until_ready(out)

    # ---- shape / sanity checks ----
    assert out["logits"].shape == (N, N_CLS)
    assert out["probs"].shape == (N, N_CLS)
    assert out["preds"].shape == (N,)
    assert bool(jnp.all(jnp.isfinite(out["logits"])))
    assert bool(jnp.allclose(jnp.sum(out["probs"], axis=-1), 1.0, atol=1e-3))

    # ---- pure-JAX reference (bf16-quantized conv weights, f32 activations) ----
    xn = (jnp.transpose(x, (0, 2, 3, 1)) - mean.reshape(1, 1, 1, C_IN)) \
        / std.reshape(1, 1, 1, C_IN)
    xpad = jnp.pad(xn, ((0, 0), (1, 1), (1, 1), (0, 0)))
    cols = [xpad[:, dy:dy + H, dx:dx + W, :] for dy in range(3) for dx in range(3)]
    patches = jnp.concatenate(cols, axis=-1).reshape(N * H * W, 9 * C_IN)
    w_mat = w_conv_f32.astype(jnp.bfloat16).astype(jnp.float32).reshape(9 * C_IN, C_OUT)
    act = jnp.maximum(patches @ w_mat + b_conv, 0.0)
    pooled = act.reshape(N, H * W, C_OUT).mean(axis=1)
    ref_logits = pooled @ w_fc + b_fc
    ref_probs = jax.nn.softmax(ref_logits, axis=-1)

    assert bool(jnp.allclose(out["logits"], ref_logits, atol=5e-2))
    assert bool(jnp.allclose(out["probs"], ref_probs, atol=5e-2))

    print("KERNEL_OK")
</pallas_src>

<mosaic_0001>
module attributes {stable_mosaic.version = 11 : i64} {
  func.func @kernel(%arg0: i32, %arg1: memref<1x256x4xf32, #tpu.memory_space<vmem>>, %arg2: memref<1x4xf32, #tpu.memory_space<vmem>>, %arg3: memref<36x128xbf16, #tpu.memory_space<vmem>>, %arg4: memref<1x128xf32, #tpu.memory_space<vmem>>, %arg5: memref<128x128xbf16, #tpu.memory_space<vmem>>, %arg6: memref<1x128xf32, #tpu.memory_space<vmem>>, %arg7: memref<1x1x128xf32, #tpu.memory_space<vmem>>, %arg8: memref<1x1x128xf32, #tpu.memory_space<vmem>>) attributes {dimension_semantics = [#tpu.dimension_semantics<parallel>], iteration_bounds = array<i64: 2>, scalar_prefetch = 0 : i64, scratch_operands = 0 : i64, tpu.core_type = #tpu.core_type<tc>, window_params = [{transform_indices = @transform_0, window_bounds = array<i64: 1, 256, 4>}, {pipeline_mode = #tpu.pipeline_mode<synchronous>, transform_indices = @transform_1, window_bounds = array<i64: 1, 4>}, {pipeline_mode = #tpu.pipeline_mode<synchronous>, transform_indices = @transform_2, window_bounds = array<i64: 36, 128>}, {pipeline_mode = #tpu.pipeline_mode<synchronous>, transform_indices = @transform_3, window_bounds = array<i64: 1, 128>}, {pipeline_mode = #tpu.pipeline_mode<synchronous>, transform_indices = @transform_4, window_bounds = array<i64: 128, 128>}, {pipeline_mode = #tpu.pipeline_mode<synchronous>, transform_indices = @transform_5, window_bounds = array<i64: 1, 128>}, {transform_indices = @transform_6, window_bounds = array<i64: 1, 1, 128>}, {transform_indices = @transform_7, window_bounds = array<i64: 1, 1, 128>}]} {
    %c0 = arith.constant 0 : index
    %c0_0 = arith.constant 0 : index
    %c0_1 = arith.constant 0 : index
    %0 = vector.load %arg1[%c0, %c0_0, %c0_1] : memref<1x256x4xf32, #tpu.memory_space<vmem>>, vector<1x256x4xf32>
    %c0_2 = arith.constant 0 : index
    %c0_3 = arith.constant 0 : index
    %1 = vector.load %arg2[%c0_2, %c0_3] : memref<1x4xf32, #tpu.memory_space<vmem>>, vector<1x4xf32>
    %2 = vector.shape_cast %1 : vector<1x4xf32> to vector<1x1x4xf32>
    %3 = vector.broadcast %2 : vector<1x1x4xf32> to vector<1x256x4xf32>
    %4 = arith.subf %0, %3 : vector<1x256x4xf32>
    %cst = arith.constant 0.000000e+00 : f32
    %5 = vector.broadcast %cst : f32 to vector<1x24x4xf32>
    %6 = tpu.concatenate %5, %4, %5 in 1 : vector<1x24x4xf32>, vector<1x256x4xf32>, vector<1x24x4xf32> -> vector<1x304x4xf32>
    %7 = tpu.iota {dimensions = array<i32: 1>} : vector<1x256x4xi32>
    %c16_i32 = arith.constant 16 : i32
    %c0_i32 = arith.constant 0 : i32
    %8 = arith.cmpi eq, %c16_i32, %c0_i32 : i32
    %c1_i32 = arith.constant 1 : i32
    %9 = arith.select %8, %c1_i32, %c16_i32 : i32
    %10 = vector.broadcast %9 : i32 to vector<1x256x4xi32>
    %11 = arith.remsi %7, %10 : vector<1x256x4xi32>
    %c0_i32_4 = arith.constant 0 : i32
    %12 = vector.broadcast %c0_i32_4 : i32 to vector<1x256x4xi32>
    %13 = arith.cmpi ne, %11, %12 : vector<1x256x4xi32>
    %c0_i32_5 = arith.constant 0 : i32
    %14 = vector.broadcast %c0_i32_5 : i32 to vector<1x256x4xi32>
    %15 = arith.cmpi slt, %11, %14 : vector<1x256x4xi32>
    %c0_i32_6 = arith.constant 0 : i32
    %16 = arith.cmpi slt, %9, %c0_i32_6 : i32
    %17 = vector.broadcast %16 : i1 to vector<1x256x4xi1>
    %18 = vector.broadcast %17 : vector<1x256x4xi1> to vector<1x256x4xi1>
    %19 = arith.xori %15, %18 : vector<1x256x4xi1>
    %20 = arith.andi %19, %13 : vector<1x256x4xi1>
    %21 = vector.broadcast %9 : i32 to vector<1x256x4xi32>
    %22 = arith.addi %11, %21 : vector<1x256x4xi32>
    %23 = arith.select %20, %22, %11 : vector<1x256x4xi1>, vector<1x256x4xi32>
    %c0_i32_7 = arith.constant 0 : i32
    %24 = vector.broadcast %c0_i32_7 : i32 to vector<1x256x4xi32>
    %25 = arith.cmpi ne, %23, %24 : vector<1x256x4xi32>
    %c15_i32 = arith.constant 15 : i32
    %26 = vector.broadcast %c15_i32 : i32 to vector<1x256x4xi32>
    %27 = arith.cmpi ne, %23, %26 : vector<1x256x4xi32>
    %28 = vector.extract_strided_slice %6 {offsets = [0, 7, 0], sizes = [1, 256, 4], strides = [1, 1, 1]} : vector<1x304x4xf32> to vector<1x256x4xf32>
    %cst_8 = arith.constant 0.000000e+00 : f32
    %29 = vector.broadcast %cst_8 : f32 to vector<1x256x4xf32>
    %30 = arith.select %25, %28, %29 : vector<1x256x4xi1>, vector<1x256x4xf32>
    %31 = vector.extract_strided_slice %6 {offsets = [0, 8, 0], sizes = [1, 256, 4], strides = [1, 1, 1]} : vector<1x304x4xf32> to vector<1x256x4xf32>
    %32 = vector.extract_strided_slice %6 {offsets = [0, 9, 0], sizes = [1, 256, 4], strides = [1, 1, 1]} : vector<1x304x4xf32> to vector<1x256x4xf32>
    %cst_9 = arith.constant 0.000000e+00 : f32
    %33 = vector.broadcast %cst_9 : f32 to vector<1x256x4xf32>
    %34 = arith.select %27, %32, %33 : vector<1x256x4xi1>, vector<1x256x4xf32>
    %35 = vector.extract_strided_slice %6 {offsets = [0, 23, 0], sizes = [1, 256, 4], strides = [1, 1, 1]} : vector<1x304x4xf32> to vector<1x256x4xf32>
    %cst_10 = arith.constant 0.000000e+00 : f32
    %36 = vector.broadcast %cst_10 : f32 to vector<1x256x4xf32>
    %37 = arith.select %25, %35, %36 : vector<1x256x4xi1>, vector<1x256x4xf32>
    %38 = vector.extract_strided_slice %6 {offsets = [0, 24, 0], sizes = [1, 256, 4], strides = [1, 1, 1]} : vector<1x304x4xf32> to vector<1x256x4xf32>
    %39 = vector.extract_strided_slice %6 {offsets = [0, 25, 0], sizes = [1, 256, 4], strides = [1, 1, 1]} : vector<1x304x4xf32> to vector<1x256x4xf32>
    %cst_11 = arith.constant 0.000000e+00 : f32
    %40 = vector.broadcast %cst_11 : f32 to vector<1x256x4xf32>
    %41 = arith.select %27, %39, %40 : vector<1x256x4xi1>, vector<1x256x4xf32>
    %42 = vector.extract_strided_slice %6 {offsets = [0, 39, 0], sizes = [1, 256, 4], strides = [1, 1, 1]} : vector<1x304x4xf32> to vector<1x256x4xf32>
    %cst_12 = arith.constant 0.000000e+00 : f32
    %43 = vector.broadcast %cst_12 : f32 to vector<1x256x4xf32>
    %44 = arith.select %25, %42, %43 : vector<1x256x4xi1>, vector<1x256x4xf32>
    %45 = vector.extract_strided_slice %6 {offsets = [0, 40, 0], sizes = [1, 256, 4], strides = [1, 1, 1]} : vector<1x304x4xf32> to vector<1x256x4xf32>
    %46 = vector.extract_strided_slice %6 {offsets = [0, 41, 0], sizes = [1, 256, 4], strides = [1, 1, 1]} : vector<1x304x4xf32> to vector<1x256x4xf32>
    %cst_13 = arith.constant 0.000000e+00 : f32
    %47 = vector.broadcast %cst_13 : f32 to vector<1x256x4xf32>
    %48 = arith.select %27, %46, %47 : vector<1x256x4xi1>, vector<1x256x4xf32>
    %49 = tpu.concatenate %30, %31, %34, %37, %38, %41, %44, %45, %48 in 2 : vector<1x256x4xf32>, vector<1x256x4xf32>, vector<1x256x4xf32>, vector<1x256x4xf32>, vector<1x256x4xf32>, vector<1x256x4xf32>, vector<1x256x4xf32>, vector<1x256x4xf32>, vector<1x256x4xf32> -> vector<1x256x36xf32>
    %50 = vector.shape_cast %49 : vector<1x256x36xf32> to vector<256x36xf32>
    %51 = arith.truncf %50 : vector<256x36xf32> to vector<256x36xbf16>
    %c0_14 = arith.constant 0 : index
    %c0_15 = arith.constant 0 : index
    %52 = vector.load %arg3[%c0_14, %c0_15] : memref<36x128xbf16, #tpu.memory_space<vmem>>, vector<36x128xbf16>
    %cst_16 = arith.constant dense<0.000000e+00> : vector<256x128xf32>
    %53 = tpu.matmul %51, %52, %cst_16 {dimension_numbers = #tpu.dot_dimension_numbers<[1], [0], [0], [1], [0, 0, 1, 1], [], []>} : vector<256x36xbf16>, vector<36x128xbf16>, vector<256x128xf32> -> vector<256x128xf32>
    %c0_17 = arith.constant 0 : index
    %c0_18 = arith.constant 0 : index
    %54 = vector.load %arg4[%c0_17, %c0_18] : memref<1x128xf32, #tpu.memory_space<vmem>>, vector<1x128xf32>
    %55 = vector.broadcast %54 : vector<1x128xf32> to vector<256x128xf32>
    %56 = arith.addf %53, %55 : vector<256x128xf32>
    %cst_19 = arith.constant 0.000000e+00 : f32
    %57 = vector.broadcast %cst_19 : f32 to vector<256x128xf32>
    %58 = arith.maximumf %56, %57 : vector<256x128xf32>
    %cst_20 = arith.constant dense<0.000000e+00> : vector<128xf32>
    %59 = vector.multi_reduction <add>, %58, %cst_20 [0] : vector<256x128xf32> to vector<128xf32>
    %60 = vector.shape_cast %59 : vector<128xf32> to vector<1x128xf32>
    %cst_21 = arith.constant 3.906250e-03 : f32
    %61 = vector.broadcast %cst_21 : f32 to vector<1x128xf32>
    %62 = arith.mulf %60, %61 : vector<1x128xf32>
    %63 = arith.truncf %62 : vector<1x128xf32> to vector<1x128xbf16>
    %c0_22 = arith.constant 0 : index
    %c0_23 = arith.constant 0 : index
    %64 = vector.load %arg5[%c0_22, %c0_23] : memref<128x128xbf16, #tpu.memory_space<vmem>>, vector<128x128xbf16>
    %cst_24 = arith.constant dense<0.000000e+00> : vector<1x128xf32>
    %65 = tpu.matmul %63, %64, %cst_24 {dimension_numbers = #tpu.dot_dimension_numbers<[1], [0], [0], [1], [0, 0, 1, 1], [], []>} : vector<1x128xbf16>, vector<128x128xbf16>, vector<1x128xf32> -> vector<1x128xf32>
    %c0_25 = arith.constant 0 : index
    %c0_26 = arith.constant 0 : index
    %66 = vector.load %arg6[%c0_25, %c0_26] : memref<1x128xf32, #tpu.memory_space<vmem>>, vector<1x128xf32>
    %67 = arith.addf %65, %66 : vector<1x128xf32>
    %68 = tpu.iota {dimensions = array<i32: 1>} : vector<1x128xi32>
    %c10_i32 = arith.constant 10 : i32
    %69 = vector.broadcast %c10_i32 : i32 to vector<1x128xi32>
    %70 = arith.cmpi slt, %68, %69 : vector<1x128xi32>
    %cst_27 = arith.constant 0xFF800000 : f32
    %71 = vector.broadcast %cst_27 : f32 to vector<1x128xf32>
    %72 = arith.select %70, %67, %71 : vector<1x128xi1>, vector<1x128xf32>
    %cst_28 = arith.constant dense<0xFF800000> : vector<1xf32>
    %73 = vector.multi_reduction <maximumf>, %72, %cst_28 [1] : vector<1x128xf32> to vector<1xf32>
    %74 = vector.shape_cast %73 : vector<1xf32> to vector<1x1xf32>
    %75 = vector.broadcast %74 : vector<1x1xf32> to vector<1x128xf32>
    %76 = arith.subf %67, %75 : vector<1x128xf32>
    %77 = math.exp %76 : vector<1x128xf32>
    %cst_29 = arith.constant 0.000000e+00 : f32
    %78 = vector.broadcast %cst_29 : f32 to vector<1x128xf32>
    %79 = arith.select %70, %77, %78 : vector<1x128xi1>, vector<1x128xf32>
    %cst_30 = arith.constant dense<0.000000e+00> : vector<1xf32>
    %80 = vector.multi_reduction <add>, %79, %cst_30 [1] : vector<1x128xf32> to vector<1xf32>
    %81 = vector.shape_cast %80 : vector<1xf32> to vector<1x1xf32>
    %82 = vector.broadcast %81 : vector<1x1xf32> to vector<1x128xf32>
    %83 = arith.divf %79, %82 : vector<1x128xf32>
    %c0_31 = arith.constant 0 : index
    %c0_32 = arith.constant 0 : index
    %c0_33 = arith.constant 0 : index
    %84 = vector.load %arg7[%c0_31, %c0_32, %c0_33] : memref<1x1x128xf32, #tpu.memory_space<vmem>>, vector<1x1x128xf32>
    %85 = vector.shape_cast %84 : vector<1x1x128xf32> to vector<1x128xf32>
    %86 = vector.shape_cast %67 : vector<1x128xf32> to vector<1x1x128xf32>
    tpu.vector_store %arg7[%c0_31, %c0_32, %c0_33], %86 {strides = array<i32>} : memref<1x1x128xf32, #tpu.memory_space<vmem>>, vector<1x1x128xf32>,
    %c0_34 = arith.constant 0 : index
    %c0_35 = arith.constant 0 : index
    %c0_36 = arith.constant 0 : index
    %87 = vector.load %arg8[%c0_34, %c0_35, %c0_36] : memref<1x1x128xf32, #tpu.memory_space<vmem>>, vector<1x1x128xf32>
    %88 = vector.shape_cast %87 : vector<1x1x128xf32> to vector<1x128xf32>
    %89 = vector.shape_cast %83 : vector<1x128xf32> to vector<1x1x128xf32>
    tpu.vector_store %arg8[%c0_34, %c0_35, %c0_36], %89 {strides = array<i32>} : memref<1x1x128xf32, #tpu.memory_space<vmem>>, vector<1x1x128xf32>,
    return
  }
  func.func @transform_0(%arg0: i32) -> (i32, i32, i32) {
    %c0_i32 = arith.constant 0 : i32
    %c0_i32_0 = arith.constant 0 : i32
    %c0_i32_1 = arith.constant 0 : i32
    return %arg0, %c0_i32, %c0_i32_0 : i32, i32, i32
  }
  func.func @transform_1(%arg0: i32) -> (i32, i32) {
    %c0_i32 = arith.constant 0 : i32
    %c0_i32_0 = arith.constant 0 : i32
    %c0_i32_1 = arith.constant 0 : i32
    return %c0_i32, %c0_i32_0 : i32, i32
  }
  func.func @transform_2(%arg0: i32) -> (i32, i32) {
    %c0_i32 = arith.constant 0 : i32
    %c0_i32_0 = arith.constant 0 : i32
    %c0_i32_1 = arith.constant 0 : i32
    return %c0_i32, %c0_i32_0 : i32, i32
  }
  func.func @transform_3(%arg0: i32) -> (i32, i32) {
    %c0_i32 = arith.constant 0 : i32
    %c0_i32_0 = arith.constant 0 : i32
    %c0_i32_1 = arith.constant 0 : i32
    return %c0_i32, %c0_i32_0 : i32, i32
  }
  func.func @transform_4(%arg0: i32) -> (i32, i32) {
    %c0_i32 = arith.constant 0 : i32
    %c0_i32_0 = arith.constant 0 : i32
    %c0_i32_1 = arith.constant 0 : i32
    return %c0_i32, %c0_i32_0 : i32, i32
  }
  func.func @transform_5(%arg0: i32) -> (i32, i32) {
    %c0_i32 = arith.constant 0 : i32
    %c0_i32_0 = arith.constant 0 : i32
    %c0_i32_1 = arith.constant 0 : i32
    return %c0_i32, %c0_i32_0 : i32, i32
  }
  func.func @transform_6(%arg0: i32) -> (i32, i32, i32) {
    %c0_i32 = arith.constant 0 : i32
    %c0_i32_0 = arith.constant 0 : i32
    %c0_i32_1 = arith.constant 0 : i32
    return %arg0, %c0_i32, %c0_i32_0 : i32, i32, i32
  }
  func.func @transform_7(%arg0: i32) -> (i32, i32, i32) {
    %c0_i32 = arith.constant 0 : i32
    %c0_i32_0 = arith.constant 0 : i32
    %c0_i32_1 = arith.constant 0 : i32
    return %arg0, %c0_i32, %c0_i32_0 : i32, i32, i32
  }
}

</mosaic_0001>

<bundles_post_ra>
// kernel: inference_forward.1
= control target key start
LH: loop header
LB: loop body
LE: loop exit
PB: predicated region body
PF: predicated region fallthrough
CT: control target
= control target key end

     0   :  { %13 = vsyncpa [#allocation3], 0  ;;  %s5844_s0 = inlined_call_operand.vmem [shape: f32[2,256,4], index: 0, kind: input, shape index: {}]   ;;  %s5845_s1 = inlined_call_operand.vmem [shape: f32[1,4], index: 1, kind: input, shape index: {}]   ;;  %s5846_s2 = inlined_call_operand.vmem [shape: bf16[36,128], index: 2, kind: input, shape index: {}]   ;;  %s5847_s3 = inlined_call_operand.vmem [shape: f32[1,128], index: 3, kind: input, shape index: {}]   ;;  %s5848_s4 = inlined_call_operand.vmem [shape: bf16[128,128], index: 4, kind: input, shape index: {}]   ;;  %s5849_s5 = inlined_call_operand.vmem [shape: f32[1,128], index: 5, kind: input, shape index: {}]   ;;  %s5850_s6 = inlined_call_operand.vmem [shape: f32[2,1,128], index: 6, kind: output, shape index: {0}]   ;;  %s5851_s7 = inlined_call_operand.hbm [shape: f32[2,1,128], index: 7, kind: output, shape index: {1}]  }
   0x1   :  { %15 = vsyncpa [#allocation3 + $0x1], 0  ;;  %s3933_s24 = smov 0   ;;  %s3935_s25 = smov 0  }
   0x2   :  { %s3937_s26 = smov 0   ;;  %s3939_s27 = smov 0  }
   0x3 LB: > { %s3954_s28 = sadd.s32 4294967295, %s3880_s27   ;;  %s2997_s29 = sadd.s32 4294967294, %s3880_s27   ;;  %s3880_s27 = sphi %s3939_s27, %s6298_s27   ;;  %s3876_s26 = sphi %s3937_s26, %s6297_s26   ;;  %s3872_s25 = sphi %s3935_s25, %s6296_s25   ;;  %s3868_s24 = sphi %s3933_s24, %s6295_s24  }
   0x4   : > { %s3958_s30 = sadd.s32 1, %s3880_s27   ;;  %s185_s8 = sadd.s32 1, %s3876_s26 }
   0x5   : > { %s182_s9 = ssub.s32 %s3880_s27, %s3958_s30  ;;  %p195_p0 = scmp.ne.s32.totalorder %s3876_s26, %s3872_s25 }
   0x6   : > { %p183_p1 = scmp.eq.s32.totalorder %s182_s9, 0  ;;  %p196_p2 = scmp.eq.s32.totalorder %s3954_s28, 1 }
   0x7   : > { %p201_p3 = scmp.ne.s32.totalorder %s3872_s25, %s3868_s24  ;;  %p202_p4 = scmp.eq.s32.totalorder %s2997_s29, 1 }
   0x8   : > { %s3969_s10 = scalar_select %p183_p1, %s3876_s26, %s185_s8  }
   0x9   : > { %p3971_p5 = por %p196_p2, %p195_p0  ;;  %p3975_p6 = por %p202_p4, %p201_p3 }
   0xa   : > { %p3000_p7 = scmp.ge.s32.totalorder %s3880_s27, 1  ;;  %p243_p8 = scmp.lt.s32.totalorder %s3880_s27, 3 }
   0xc   : > { %p244_p9 = pnand %p3000_p7, %p243_p8 }
   0xe   : > { %247 = sbr.rel (%p244_p9) target bundleno = 1191 (0x4a7), region = 44 }
  0x15   : > { %p277_p10 = scmp.lt.s32.totalorder %s3954_s28, 1  ;;  %v5852_v0 = vlaneseq  ;;  %v5853_v1 = vmov 0.0   ;;  %v3992_v3 = vld [vmem:[%s5845_s1] ss:$0 sm:$0xff]  ;;  %vm5864_vm0 = vcmask 1046528   ;;  %vm5866_vm1 = vcmask 1040384  }
  0x16   : > { %3102 = vmatprep.subr.bf16.mxu1 %v5853_v1  ;;  %v4005_v8 = vrot.slane %v5853_v1, 1  ;;  %v4017_v18 = vrot.slane %v5853_v1, 7  ;;  %s3883_s20 = smov 16   ;;  %s3884_s21 = smov 4   ;;  %vm2545_vm14 = vcmask 1041408  }
  0x17   : > { %s3984_s13 = scalar_select %p277_p10, %s3954_s28, 1  ;;  %v3987_v2 = vshrl.u32 %v5852_v0, 7 }
  0x18   : > { %5889 = vst [vmem:[#allocation5_spill] sm:$0xff] %v4005_v8  ;;  %s3885_s22 = smov 8   ;;  %s3886_s8 = smov 12  }
  0x19   : > { %s3035_s16 = sshll.u32 %s3984_s13, 8  ;;  %v359_v4 = vadd.s32 8, %v3987_v2  ;;  %v361_v5 = vadd.s32 24, %v3987_v2  ;;  %v360_v6 = vadd.s32 16, %v3987_v2  ;;  %v394_v7 = vand.u32 15, %v3987_v2  ;;  %s3887_s15 = smov 20  }
  0x1a   : > { %s4002_s19 = scalar_lea.vmem %s5844_s0, %s3035_s16  ;;  %v364_v57 = vadd.s32 48, %v3987_v2  ;;  %v362_v58 = vadd.s32 32, %v3987_v2  ;;  %s3888_s16 = smov 24   ;;  %v366_v28 = vadd.s32 64, %v3987_v2 }
  0x1b   : > { %v288_v9 = vld [vmem:[%s4002_s19 + $0x10] sm:$0xff]  ;;  %v289_v10 = vld [vmem:[%s4002_s19 + $0x18] sm:$0xff]  ;;  %v286_v11 = vld [vmem:[%s4002_s19] sm:$0xff]  ;;  %v401_v12 = vand.u32 15, %v359_v4  ;;  %v415_v13 = vand.u32 15, %v361_v5  ;;  %v408_v21 = vand.u32 15, %v360_v6  ;;  %s284_s23 = scalar_lea.vmem %s5850_s6, %s3984_s13 }
  0x1c   : > { %v327_v14 = vsub.f32 %v288_v9, %v3992_v3  ;;  %v4012_v15 = vsub.f32 %v289_v10, %v3992_v3  ;;  %v325_v16 = vsub.f32 %v286_v11, %v3992_v3  ;;  %v287_v17 = vld [vmem:[%s4002_s19 + $0x8] sm:$0xff]  ;;  %vm4024_vm3 = vcmp.ne.s32.totalorder %v394_v7, 0  ;;  %v290_v39 = vld [vmem:[%s4002_s19 + $0x20] sm:$0xff]  ;;  %v292_v9 = vld [vmem:[%s4002_s19 + $0x30] sm:$0xff]  ;;  %s3889_s17 = smov 28   ;;  %s3890_s18 = smov 32  }
  0x1d   : > { %v326_v19 = vsub.f32 %v287_v17, %v3992_v3  ;;  %vm4020_vm2 = vcmp.ne.s32.totalorder %v401_v12, 15  ;;  %vm4032_vm4 = vcmp.ne.s32.totalorder %v415_v13, 15  ;;  %vm4046_vm5 = vcmp.ne.s32.totalorder %v408_v21, 0  ;;  %v291_v43 = vld [vmem:[%s4002_s19 + $0x28] sm:$0xff]  ;;  %v3802_v7 = vld [vmem:[%s5846_s2] sm:$0xff]   ;;  %s275_s13 = sand.u32 1, %s3872_s25  }
  0x1e   : > { %v4029_v23 = vpack.i.bf16 %v4012_v15, %v327_v14  ;;  %v3172_v24 = vpack.i.bf16 %v325_v16, %v5853_v1  ;;  %v999_v25 = vrot.slane %v325_v16, 1  ;;  %v1003_v26 = vrot.slane %v327_v14, 1  ;;  %3064 = vmatprep.subr.bf16.mxu0 %v3802_v7  ;;  %v3803_v21 = vld [vmem:[%s5846_s2 + $0x8] sm:$0xff]   ;;  %s3032_s29 = sshll.u32 %s3954_s28, 4  ;;  %s276_s9 = scalar_lea.vmem [#allocation2], %s275_s13 }
  0x1f   : > { %v3177_v27 = vpack.i.bf16 %v327_v14, %v326_v19  ;;  %v1001_v29 = vrot.slane %v326_v19, 1  ;;  %v874_v30 = vrot.slane %v326_v19, 7  ;;  %v876_v32 = vrot.slane %v327_v14, 7  ;;  %3065 = vmatpush3.bf16.msra.mxu0 %v3802_v7  ;;  %s2923_s14 = sshll.u32 %s276_s9, 4  ;;  %s3892_s28 = smov [#allocation2]   ;;  %s5804_s14 = int_to_ptr.vmem [resolvable:$true] %s2923_s14 }
  0x20   : > { %3188 = vrot.lane.b32.xlu1 %v4029_v23, %s3883_s20  ;;  %3173 = vrot.lane.b32.xlu0 %v3172_v24, %s3884_s21  ;;  %v1000_v31 = vsel %vm5864_vm0, %v4005_v8, %v999_v25  ;;  %v878_v33 = vrot.slane %v4012_v15, 7  ;;  %v872_v34 = vrot.slane %v325_v16, 7  ;;  %v3182_v44 = vpack.i.bf16 %v326_v19, %v325_v16 }
  0x21   : > { %v1094_v35 = vsel %vm4020_vm2, %v1000_v31, 0.0  ;;  %v1002_v36 = vsel %vm5864_vm0, %v999_v25, %v1001_v29  ;;  %v1004_v37 = vsel %vm5864_vm0, %v1001_v29, %v1003_v26  ;;  %v4055_v42 = vsel %vm5866_vm1, %v874_v30, %v876_v32  ;;  %3066 = vmatprep.subr.bf16.mxu0 %v3803_v21  ;;  %v307_v29 = vld [vmem:[%s4002_s19 + $0xa8] sm:$0xff] }
  0x22   : > { %v3192_v40 = vpack.i.bf16 %v1094_v35, %v4005_v8  ;;  %v1096_v41 = vsel %vm4032_vm4, %v1004_v37, 0.0  ;;  %v4059_v45 = vsel %vm5866_vm1, %v876_v32, %v878_v33  ;;  %v4063_v46 = vsel %vm5866_vm1, %v4017_v18, %v872_v34 }
  0x23   : > { %v3197_v47 = vpack.i.bf16 %v1096_v41, %v1002_v36  ;;  %v1134_v48 = vsel %vm4046_vm5, %v4055_v42, 0.0  ;;  %v4074_v50 = vsub.f32 %v290_v39, %v3992_v3  ;;  %v4077_v51 = vsel %vm5866_vm1, %v872_v34, %v874_v30  ;;  %3067 = vmatpush3.bf16.msra.mxu0 %v3803_v21  ;;  %v293_v41 = vld [vmem:[%s4002_s19 + $0x38] sm:$0xff] }
  0x24   : > { %3178 = vrot.lane.b32.xlu0 %v3177_v27, %s3884_s21  ;;  %3193 = vrot.lane.b32.xlu1 %v3192_v40, %s3885_s22  ;;  %v1132_v52 = vsel %vm4024_vm3, %v4063_v46, 0.0  ;;  %v1005_v53 = vrot.slane %v4012_v15, 1  ;;  %v4084_v54 = vsub.f32 %v291_v43, %v3992_v3  ;;  %v3207_v59 = vpack.i.bf16 %v4059_v45, %v1134_v48  ;;  %v294_v43 = vld [vmem:[%s4002_s19 + $0x40] sm:$0xff] }
  0x25   : > { %v1007_v55 = vrot.slane %v4074_v50, 1  ;;  %v880_v56 = vrot.slane %v4074_v50, 7  ;;  %v3202_v60 = vpack.i.bf16 %v4077_v51, %v1132_v52  ;;  %v1170_v62 = vsel %vm4020_vm2, %v1004_v37, 0.0 }
  0x26   : > { %v4100_v63 = vsel %vm5864_vm0, %v1003_v26, %v1005_v53  ;;  %v882_v5 = vrot.slane %v4084_v54, 7  ;;  %v3212_v11 = vpack.i.bf16 %v1170_v62, %v1002_v36  ;;  %v436_v12 = vand.u32 15, %v364_v57 }
  0x27   : > { %v4095_v61 = vsel %vm5864_vm0, %v1005_v53, %v1007_v55  ;;  %v4107_v6 = vsel %vm5866_vm1, %v878_v33, %v880_v56  ;;  %v1203_v16 = vsel %vm4024_vm3, %v4055_v42, 0.0  ;;  %v422_v17 = vand.u32 15, %v362_v58 }
  0x28   : > { %3183 = vrot.lane.b32.xlu0 %v3182_v44, %s3883_s20  ;;  %3198 = vrot.lane.b32.xlu1 %v3197_v47, %s3885_s22  ;;  %v1172_v4 = vsel %vm4032_vm4, %v4095_v61, 0.0  ;;  %v4119_v13 = vsel %vm5866_vm1, %v880_v56, %v882_v5  ;;  %v1205_v14 = vsel %vm4046_vm5, %v4107_v6, 0.0  ;;  %v4128_v19 = vsub.f32 %v292_v9, %v3992_v3 }
  0x29   : > { %v3217_v10 = vpack.i.bf16 %v1172_v4, %v4100_v63  ;;  %v3227_v24 = vpack.i.bf16 %v4119_v13, %v1205_v14  ;;  %v3222_v25 = vpack.i.bf16 %v4059_v45, %v1203_v16  ;;  %vm4137_vm6 = vcmp.ne.s32.totalorder %v436_v12, 0 }
  0x2a   : > { %v365_v27 = vadd.s32 56, %v3987_v2  ;;  %vm4145_vm7 = vcmp.ne.s32.totalorder %v422_v17, 0  ;;  %v1009_v31 = vrot.slane %v4084_v54, 1  ;;  %v1011_v32 = vrot.slane %v4128_v19, 1 }
  0x2b   : > { %v363_v33 = vadd.s32 40, %v3987_v2  ;;  %v3237_v35 = vpack.i.bf16 %v4084_v54, %v4074_v50  ;;  %v1236_v36 = vsel %vm4020_vm2, %v4095_v61, 0.0  ;;  %v3247_v44 = vpack.i.bf16 %v4074_v50, %v4012_v15 }
  0x2c   : > { %3208 = vrot.lane.b32.xlu1 %v3207_v59, %s3886_s8  ;;  %3203 = vrot.lane.b32.xlu0 %v3202_v60, %s3886_s8  ;;  %v443_v37 = vand.u32 15, %v365_v27  ;;  %v4165_v39 = vsel %vm5864_vm0, %v1009_v31, %v1011_v32  ;;  %v3242_v20 = vpack.i.bf16 %v1236_v36, %v4100_v63  ;;  %v1010_v47 = vsel %vm5864_vm0, %v1007_v55, %v1009_v31 }
  0x2d   : > { %v429_v40 = vand.u32 15, %v363_v33  ;;  %v1238_v48 = vsel %vm4032_vm4, %v4165_v39, 0.0  ;;  %v4184_v53 = vsub.f32 %v293_v41, %v3992_v3  ;;  %v884_v50 = vrot.slane %v4128_v19, 7 }
  0x2e   : > { %vm4179_vm8 = vcmp.ne.s32.totalorder %v443_v37, 15  ;;  %v368_v55 = vadd.s32 80, %v3987_v2  ;;  %v3257_v57 = vpack.i.bf16 %v4128_v19, %v4084_v54  ;;  %v3252_v58 = vpack.i.bf16 %v1238_v48, %v1010_v47 }
  0x2f   : > { %vm4189_vm9 = vcmp.ne.s32.totalorder %v429_v40, 15  ;;  %v450_v60 = vand.u32 15, %v366_v28  ;;  %v1100_v62 = vsel %vm4179_vm8, %v4165_v39, 0.0  ;;  %v886_v7 = vrot.slane %v4184_v53, 7 }
  0x30   : > { %3218 = vrot.lane.b32.xlu1 %v3217_v10, %s3887_s15  ;;  %3213 = vrot.lane.b32.xlu0 %v3212_v11, %s3887_s15  ;;  %v464_v59 = vand.u32 15, %v368_v55  ;;  %v1098_v4 = vsel %vm4189_vm9, %v4095_v61, 0.0  ;;  %v4211_v9 = vsel %vm5866_vm1, %v882_v5, %v884_v50  ;;  %v3267_v61 = vpack.i.bf16 %v1100_v62, %v1010_v47 }
  0x31   : > { %v3262_v12 = vpack.i.bf16 %v1098_v4, %v4100_v63  ;;  %vm4226_vm11 = vcmp.ne.s32.totalorder %v450_v60, 0  ;;  %v4231_v14 = vsel %vm5866_vm1, %v884_v50, %v886_v7  ;;  %v1138_v16 = vsel %vm4137_vm6, %v4211_v9, 0.0 }
  0x32   : > { %vm4216_vm10 = vcmp.ne.s32.totalorder %v464_v59, 0  ;;  %5910 = vst [vmem:[#allocation6_spill] sm:$0xff] %v4231_v14  ;;  %v1136_v17 = vsel %vm4145_vm7, %v4107_v6, 0.0  ;;  %v1013_v21 = vrot.slane %v4184_v53, 1  ;;  %v3277_v27 = vpack.i.bf16 %v4231_v14, %v1138_v16 }
  0x33   : > { %v3272_v31 = vpack.i.bf16 %v4119_v13, %v1136_v17  ;;  %v3287_v37 = vpack.i.bf16 %v4184_v53, %v4128_v19 }
  0x34   : > { %3228 = vrot.lane.b32.xlu1 %v3227_v24, %s3888_s16  ;;  %3223 = vrot.lane.b32.xlu0 %v3222_v25, %s3888_s16  ;;  %v295_v25 = vld [vmem:[%s4002_s19 + $0x48] sm:$0xff]  ;;  %v1014_v40 = vsel %vm5864_vm0, %v1011_v32, %v1013_v21  ;;  %v1207_v32 = vsel %vm4145_vm7, %v4211_v9, 0.0 }
  0x35   : > { %v334_v33 = vsub.f32 %v295_v25, %v3992_v3  ;;  %v5927_v25 = vmov 0 }
  0x37   : > { %v1017_v28 = vrot.slane %v334_v33, 1 }
  0x38   : > { %3238 = vrot.lane.b32.xlu1 %v3237_v35, %s3889_s17  ;;  %3233 = vrot.lane.b32.xlu0 %v4029_v23, %s3889_s17  ;;  %v4187_v23 = vsub.f32 %v294_v43, %v3992_v3  ;;  %v1174_v43 = vsel %vm4189_vm9, %v4165_v39, 0.0 }
  0x39   : > { %v3292_v50 = vpack.i.bf16 %v1174_v43, %v1010_v47  ;;  %v3302_v47 = vpack.i.bf16 %v4231_v14, %v1207_v32 }
  0x3a   : > { %v888_v56 = vrot.slane %v4187_v23, 7  ;;  %v1015_v24 = vrot.slane %v4187_v23, 1  ;;  %v3317_v59 = vpack.i.bf16 %v334_v33, %v4187_v23 }
  0x3c   : > { %3248 = vrot.lane.b32.xlu1 %v3247_v44, %s3884_s21  ;;  %3243 = vrot.lane.b32.xlu0 %v3242_v20, %s3890_s18  ;;  %v4214_v10 = vsel %vm5866_vm1, %v886_v7, %v888_v56  ;;  %v1016_v36 = vsel %vm5864_vm0, %v1013_v21, %v1015_v24  ;;  %v890_v44 = vrot.slane %v334_v33, 7  ;;  %v296_v20 = vld [vmem:[%s4002_s19 + $0x50] sm:$0xff]  ;;  %v1018_v17 = vsel %vm5864_vm0, %v1015_v24, %v1017_v28 }
  0x3d   : > { %v1176_v41 = vsel %vm4179_vm8, %v1016_v36, 0.0  ;;  %v1209_v19 = vsel %vm4137_vm6, %v4214_v10, 0.0  ;;  %v4276_v39 = vsub.f32 %v296_v20, %v3992_v3  ;;  %v1240_v60 = vsel %vm4189_vm9, %v1016_v36, 0.0 }
  0x3e   : > { %v3297_v48 = vpack.i.bf16 %v1176_v41, %v1014_v40  ;;  %v4267_v55 = vsel %vm5866_vm1, %v888_v56, %v890_v44  ;;  %v3322_v16 = vpack.i.bf16 %v1240_v60, %v1014_v40 }
  0x3f   : > { %5911 = vst [vmem:[#allocation7_spill] sm:$0xff] %v4267_v55  ;;  %v1019_v56 = vrot.slane %v4276_v39, 1  ;;  %v3337_v52 = vpack.i.bf16 %v4276_v39, %v334_v33  ;;  %v3804_v33 = vld [vmem:[%s5846_s2 + $0x10] ss:$0 sps:$4 sm:$0x33]  }
  0x40   : > { %3258 = vrot.lane.b32.xlu1 %v3257_v57, %s3884_s21  ;;  %3253 = vrot.lane.b32.xlu0 %v3252_v58, %s3890_s18  ;;  %v369_v57 = vadd.s32 88, %v3987_v2  ;;  %v367_v58 = vadd.s32 72, %v3987_v2 }
  0x41   : > { %v1020_v62 = vsel %vm5864_vm0, %v1017_v28, %v1019_v56  ;;  %3122 = vmatprep.subr.msk.bf16.mxu0 %vm2545_vm14, %v3804_v33  ;;  %v2547_v28 = vsel %vm2545_vm14, %v3804_v33, 0 }
  0x42   : > { %v471_v4 = vand.u32 15, %v369_v57  ;;  %v457_v7 = vand.u32 15, %v367_v58  ;;  %v1242_v15 = vsel %vm4179_vm8, %v1020_v62, 0.0  ;;  %3069 = vmatpush3.bf16.msra.mxu0 %v2547_v28  ;;  %v372_v28 = vadd.s32 112, %v3987_v2 }
  0x44   : > { %3268 = vrot.lane.b32.xlu1 %v3267_v61, %s3885_s22  ;;  %3263 = vrot.lane.b32.xlu0 %v3262_v12, %s3885_s22  ;;  %v297_v61 = vld [vmem:[%s4002_s19 + $0x58] sm:$0xff]  ;;  %v3327_v12 = vpack.i.bf16 %v4187_v23, %v4184_v53  ;;  %vm4302_vm12 = vcmp.ne.s32.totalorder %v471_v4, 15  ;;  %vm4306_vm13 = vcmp.ne.s32.totalorder %v457_v7, 15  ;;  %v298_v53 = vld [vmem:[%s4002_s19 + $0x60] sm:$0xff]  ;;  %v3332_v23 = vpack.i.bf16 %v1242_v15, %v1018_v17 }
  0x45   : > { %v4300_v21 = vsub.f32 %v297_v61, %v3992_v3  ;;  %v1104_v24 = vsel %vm4302_vm12, %v1020_v62, 0.0  ;;  %v4324_v20 = vsub.f32 %v298_v53, %v3992_v3  ;;  %v370_v7 = vadd.s32 96, %v3987_v2 }
  0x46   : > { %v1178_v15 = vsel %vm4306_vm13, %v1020_v62, 0.0 }
  0x47   : > { %v894_v41 = vrot.slane %v4300_v21, 7  ;;  %v1021_v32 = vrot.slane %v4300_v21, 1  ;;  %v896_v4 = vrot.slane %v4324_v20, 7  ;;  %v3367_v61 = vpack.i.bf16 %v4300_v21, %v4276_v39 }
  0x48   : > { %3278 = vrot.lane.b32.xlu1 %v3277_v27, %s3886_s8  ;;  %3273 = vrot.lane.b32.xlu0 %v3272_v31, %s3886_s8  ;;  %v892_v31 = vrot.slane %v4276_v39, 7 }
  0x49   : > { %v4369_v53 = vsel %vm5866_vm1, %v894_v41, %v896_v4 }
  0x4a   : > { %v4321_v43 = vsel %vm5866_vm1, %v890_v44, %v892_v31  ;;  %5918 = vst [vmem:[#allocation10_spill] sm:$0xff] %v4369_v53  ;;  %v1213_v62 = vsel %vm4216_vm10, %v4369_v53, 0.0 }
  0x4b   : > { %5916 = vst [vmem:[#allocation8_spill] sm:$0xff] %v4321_v43  ;;  %v1142_v44 = vsel %vm4216_vm10, %v4321_v43, 0.0 }
  0x4c   : > { %3288 = vrot.lane.b32.xlu1 %v3287_v37, %s3883_s20  ;;  %3283 = vrot.lane.b32.xlu0 %v3237_v35, %s3883_s20  ;;  %v3307_v35 = vpack.i.bf16 %v4267_v55, %v1209_v19  ;;  %v1140_v19 = vsel %vm4226_vm11, %v4214_v10, 0.0 }
  0x4d   : > { %v3352_v57 = vpack.i.bf16 %v4267_v55, %v1140_v19  ;;  %v373_v19 = vadd.s32 120, %v3987_v2 }
  0x50   : > { %3298 = vrot.lane.b32.xlu1 %v3297_v48, %s3887_s15  ;;  %3293 = vrot.lane.b32.xlu0 %v3292_v50, %s3887_s15  ;;  %v3347_v48 = vpack.i.bf16 %v1104_v24, %v1018_v17 }
  0x54   : > { %3308 = vrot.lane.b32.xlu1 %v3307_v35, %s3888_s16  ;;  %3303 = vrot.lane.b32.xlu0 %v3302_v47, %s3888_s16  ;;  %v1023_v35 = vrot.slane %v4324_v20, 1  ;;  %v299_v47 = vld [vmem:[%s4002_s19 + $0x68] sm:$0xff] }
  0x55   : > { %v4348_v58 = vsub.f32 %v299_v47, %v3992_v3 }
  0x56   : > { %v4351_v60 = vsel %vm5864_vm0, %v1021_v32, %v1023_v35 }
  0x57   : > { %v4406_v47 = vpack.i.bf16 %v4348_v58, %v4324_v20 }
  0x58   : > { %3318 = vrot.lane.b32.xlu1 %v3317_v59, %s3889_s17  ;;  %3313 = vrot.lane.b32.xlu0 %v3287_v37, %s3889_s17  ;;  %v1102_v37 = vsel %vm4306_vm13, %v1016_v36, 0.0  ;;  %v4332_v36 = vsel %vm5866_vm1, %v892_v31, %v894_v41  ;;  %v898_v31 = vrot.slane %v4348_v58, 7 }
  0x59   : > { %v3342_v50 = vpack.i.bf16 %v1102_v37, %v1014_v40  ;;  %5917 = vst [vmem:[#allocation9_spill] sm:$0xff] %v4332_v36  ;;  %v3357_v40 = vpack.i.bf16 %v4332_v36, %v1142_v44  ;;  %v1211_v37 = vsel %vm4226_vm11, %v4321_v43, 0.0 }
  0x5a   : > { %v4376_v24 = vsel %vm5866_vm1, %v896_v4, %v898_v31  ;;  %v374_v4 = vadd.s32 128, %v3987_v2 }
  0x5b   : > { %5919 = vst [vmem:[#allocation11_spill] sm:$0xff] %v4376_v24  ;;  %v3387_v33 = vpack.i.bf16 %v4376_v24, %v1213_v62 }
  0x5c   : > { %3328 = vrot.lane.b32.xlu1 %v3327_v12, %s3884_s21  ;;  %3323 = vrot.lane.b32.xlu0 %v3322_v16, %s3890_s18  ;;  %v4360_v12 = vsel %vm5864_vm0, %v1019_v56, %v1021_v32  ;;  %v1180_v16 = vsel %vm4302_vm12, %v4351_v60, 0.0  ;;  %v3372_v56 = vpack.i.bf16 %v1178_v15, %v1018_v17  ;;  %v371_v32 = vadd.s32 104, %v3987_v2 }
  0x5d   : > { %v3377_v39 = vpack.i.bf16 %v1180_v16, %v4360_v12  ;;  %v499_v16 = vand.u32 15, %v373_v19 }
  0x5e   : > { %v485_v15 = vand.u32 15, %v371_v32 }
  0x5f   : > { %vm4430_vm2 = vcmp.ne.s32.totalorder %v499_v16, 15 }
  0x60   : > { %3338 = vrot.lane.b32.xlu1 %v3337_v52, %s3884_s21  ;;  %3333 = vrot.lane.b32.xlu0 %v3332_v23, %s3890_s18  ;;  %v478_v52 = vand.u32 15, %v370_v7  ;;  %v300_v23 = vld [vmem:[%s4002_s19 + $0x70] sm:$0xff]  ;;  %vm4434_vm4 = vcmp.ne.s32.totalorder %v485_v15, 15 }
  0x61   : > { %v4385_v41 = vsub.f32 %v300_v23, %v3992_v3 }
  0x62   : > { %vm4387_vm15 = vcmp.ne.s32.totalorder %v478_v52, 0  ;;  %v3407_v52 = vpack.i.bf16 %v4324_v20, %v4300_v21 }
  0x63   : > { %v1027_v44 = vrot.slane %v4385_v41, 1 }
  0x64   : > { %3348 = vrot.lane.b32.xlu1 %v3347_v48, %s3885_s22  ;;  %3343 = vrot.lane.b32.xlu0 %v3342_v50, %s3885_s22  ;;  %v3382_v48 = vpack.i.bf16 %v4332_v36, %v1211_v37  ;;  %v1025_v50 = vrot.slane %v4348_v58, 1  ;;  %v308_v36 = vld [vmem:[%s4002_s19 + $0xb0] sm:$0xff] }
  0x66   : > { %v1028_v7 = vsel %vm5864_vm0, %v1025_v50, %v1027_v44  ;;  %v1026_v62 = vsel %vm5864_vm0, %v1023_v35, %v1025_v50 }
  0x67   : > { %v1246_v37 = vsel %vm4302_vm12, %v1028_v7, 0.0  ;;  %v1108_v32 = vsel %vm4430_vm2, %v1028_v7, 0.0 }
  0x68   : > { %3358 = vrot.lane.b32.xlu1 %v3357_v40, %s3886_s8  ;;  %3353 = vrot.lane.b32.xlu0 %v3352_v57, %s3886_s8  ;;  %v1244_v40 = vsel %vm4306_vm13, %v4351_v60, 0.0  ;;  %v301_v57 = vld [vmem:[%s4002_s19 + $0x78] sm:$0xff]  ;;  %v3412_v35 = vpack.i.bf16 %v1246_v37, %v1026_v62 }
  0x69   : > { %v3402_v27 = vpack.i.bf16 %v1244_v40, %v4360_v12  ;;  %v4424_v23 = vsub.f32 %v301_v57, %v3992_v3  ;;  %v305_v40 = vld [vmem:[%s4002_s19 + $0x98] sm:$0xff] }
  0x6b   : > { %v902_v19 = vrot.slane %v4424_v23, 7 }
  0x6c   : > { %3368 = vrot.lane.b32.xlu1 %v3367_v61, %s3883_s20  ;;  %3363 = vrot.lane.b32.xlu0 %v3317_v59, %s3883_s20  ;;  %v5920_v59 = vmov 0 }
  0x6d   : > { %v5921_v59 = vsel %vm4387_vm15, 4294967295, %v5920_v59 }
  0x6e   : > { %5922 = vst [vmem:[#allocation12_spill] sm:$0xff] %v5921_v59 }
  0x70   : > { %3378 = vrot.lane.b32.xlu1 %v3377_v39, %s3887_s15  ;;  %3373 = vrot.lane.b32.xlu0 %v3372_v56, %s3887_s15  ;;  %v492_v39 = vand.u32 15, %v372_v28  ;;  %v900_v56 = vrot.slane %v4385_v41, 7  ;;  %v5931_v28 = vmov 0 }
  0x72   : > { %vm4443_vm8 = vcmp.ne.s32.totalorder %v492_v39, 0  ;;  %v4448_v50 = vsel %vm5866_vm1, %v898_v31, %v900_v56  ;;  %v4473_v16 = vsel %vm5866_vm1, %v900_v56, %v902_v19  ;;  %v1029_v39 = vrot.slane %v4424_v23, 1 }
  0x73   : > { %v5928_v25 = vsel %vm4443_vm8, 4294967295, %v5927_v25  ;;  %5930 = vst [vmem:[#allocation14_spill] sm:$0xff] %v4448_v50  ;;  %5934 = vst [vmem:[#allocation16_spill] sm:$0xff] %v4473_v16  ;;  %v1146_v15 = vsel %vm4443_vm8, %v4448_v50, 0.0 }
  0x74   : > { %3388 = vrot.lane.b32.xlu1 %v3387_v33, %s3888_s16  ;;  %3383 = vrot.lane.b32.xlu0 %v3382_v48, %s3888_s16  ;;  %v506_v33 = vand.u32 15, %v374_v4  ;;  %v302_v48 = vld [vmem:[%s4002_s19 + $0x80] sm:$0xff]  ;;  %5929 = vst [vmem:[#allocation13_spill] sm:$0xff] %v5928_v25 }
  0x75   : > { %v4464_v31 = vsub.f32 %v302_v48, %v3992_v3 }
  0x76   : > { %vm4456_vm9 = vcmp.ne.s32.totalorder %v506_v33, 0 }
  0x77   : > { %v5932_v28 = vsel %vm4456_vm9, 4294967295, %v5931_v28  ;;  %v1031_v37 = vrot.slane %v4464_v31, 1  ;;  %v3487_v34 = vpack.i.bf16 %v4464_v31, %v4424_v23 }
  0x78   : > { %3398 = vrot.lane.b32.xlu1 %v4406_v47, %s3889_s17  ;;  %3393 = vrot.lane.b32.xlu0 %v3367_v61, %s3889_s17  ;;  %v3417_v61 = vpack.i.bf16 %v4385_v41, %v4348_v58  ;;  %v1106_v58 = vsel %vm4434_vm4, %v4351_v60, 0.0  ;;  %5933 = vst [vmem:[#allocation15_spill] sm:$0xff] %v5932_v28  ;;  %v3427_v60 = vpack.i.bf16 %v1108_v32, %v1026_v62 }
  0x79   : > { %v3422_v4 = vpack.i.bf16 %v1106_v58, %v4360_v12  ;;  %v3437_v12 = vpack.i.bf16 %v4473_v16, %v1146_v15  ;;  %v4495_v48 = vsel %vm5864_vm0, %v1029_v39, %v1031_v37  ;;  %v3447_v32 = vpack.i.bf16 %v4424_v23, %v4385_v41 }
  0x7a   : > { %v1182_v58 = vsel %vm4434_vm4, %v1028_v7, 0.0  ;;  %v1248_v54 = vsel %vm4434_vm4, %v4495_v48, 0.0 }
  0x7b   : > { %v3452_v0 = vpack.i.bf16 %v1182_v58, %v1026_v62  ;;  %v5937_v62 = vmov 0  ;;  %v377_v58 = vadd.s32 152, %v3987_v2 }
  0x7c   : > { %3408 = vrot.lane.b32.xlu1 %v3407_v52, %s3884_s21  ;;  %3403 = vrot.lane.b32.xlu0 %v3402_v27, %s3890_s18  ;;  %v1144_v52 = vsel %vm4387_vm15, %v4369_v53, 0.0  ;;  %v303_v27 = vld [vmem:[%s4002_s19 + $0x88] sm:$0xff] }
  0x7d   : > { %v3432_v56 = vpack.i.bf16 %v4376_v24, %v1144_v52  ;;  %v4489_v33 = vsub.f32 %v303_v27, %v3992_v3  ;;  %v4509_v52 = vsel %vm5864_vm0, %v1027_v44, %v1029_v39  ;;  %v1184_v27 = vsel %vm4430_vm2, %v4495_v48, 0.0 }
  0x7e   : > { %v3457_v41 = vpack.i.bf16 %v1184_v27, %v4509_v52  ;;  %v375_v27 = vadd.s32 136, %v3987_v2  ;;  %v3482_v20 = vpack.i.bf16 %v1248_v54, %v4509_v52 }
  0x80   : > { %3418 = vrot.lane.b32.xlu1 %v3417_v61, %s3884_s21  ;;  %3413 = vrot.lane.b32.xlu0 %v3412_v35, %s3890_s18  ;;  %v376_v61 = vadd.s32 144, %v3987_v2  ;;  %v904_v35 = vrot.slane %v4464_v31, 7  ;;  %v513_v63 = vand.u32 15, %v375_v27 }
  0x82   : > { %v520_v15 = vand.u32 15, %v376_v61  ;;  %vm4607_vm4 = vcmp.ne.s32.totalorder %v513_v63, 15 }
  0x83   : > { %v1110_v21 = vsel %vm4607_vm4, %v4495_v48, 0.0 }
  0x84   : > { %3428 = vrot.lane.b32.xlu1 %v3427_v60, %s3885_s22  ;;  %3423 = vrot.lane.b32.xlu0 %v3422_v4, %s3885_s22  ;;  %v906_v60 = vrot.slane %v4489_v33, 7  ;;  %v304_v4 = vld [vmem:[%s4002_s19 + $0x90] sm:$0xff]  ;;  %vm4531_vm12 = vcmp.ne.s32.totalorder %v520_v15, 0  ;;  %v3502_v53 = vpack.i.bf16 %v1110_v21, %v4509_v52 }
  0x85   : > { %v4519_v7 = vsub.f32 %v304_v4, %v3992_v3  ;;  %v5938_v62 = vsel %vm4531_vm12, 4294967295, %v5937_v62 }
  0x86   : > { %v4526_v44 = vsel %vm5866_vm1, %v904_v35, %v906_v60  ;;  %5939 = vst [vmem:[#allocation19_spill] sm:$0xff] %v5938_v62 }
  0x87   : > { %5936 = vst [vmem:[#allocation18_spill] sm:$0xff] %v4526_v44 }
  0x88   : > { %3438 = vrot.lane.b32.xlu1 %v3437_v12, %s3886_s8  ;;  %3433 = vrot.lane.b32.xlu0 %v3432_v56, %s3886_s8  ;;  %v378_v12 = vadd.s32 160, %v3987_v2  ;;  %v4516_v56 = vsel %vm5866_vm1, %v902_v19, %v904_v35  ;;  %v1215_v19 = vsel %vm4387_vm15, %v4448_v50, 0.0 }
  0x89   : > { %5935 = vst [vmem:[#allocation17_spill] sm:$0xff] %v4516_v56  ;;  %v1217_v39 = vsel %vm4443_vm8, %v4516_v56, 0.0  ;;  %v3462_v15 = vpack.i.bf16 %v4473_v16, %v1215_v19  ;;  %vm5878_vm8 = vcmask 64512   ;;  %v1148_v22 = vsel %vm4456_vm9, %v4516_v56, 0.0 }
  0x8a   : > { %v534_v61 = vand.u32 15, %v378_v12  ;;  %v3467_v4 = vpack.i.bf16 %v4526_v44, %v1217_v39  ;;  %v306_v12 = vld [vmem:[%s4002_s19 + $0xa0] sm:$0xff]  ;;  %v1035_v39 = vrot.slane %v4519_v7, 1 }
  0x8b   : > { %v4573_v17 = vsub.f32 %v306_v12, %v3992_v3 }
  0x8c   : > { %3448 = vrot.lane.b32.xlu1 %v3447_v32, %s3883_s20  ;;  %3443 = vrot.lane.b32.xlu0 %v4406_v47, %s3883_s20  ;;  %v908_v47 = vrot.slane %v4519_v7, 7  ;;  %vm4552_vm13 = vcmp.ne.s32.totalorder %v534_v61, 0  ;;  %v4570_v61 = vpack.i.bf16 %v4489_v33, %v4464_v31 }
  0x8d   : > { %v5860_v49 = vrot.slane %v4573_v17, 1  ;;  %v912_v54 = vrot.slane %v4573_v17, 7 }
  0x8e   : > { %v4549_v57 = vsel %vm5866_vm1, %v906_v60, %v908_v47  ;;  %v527_v60 = vand.u32 15, %v377_v58 }
  0x8f   : > { %5940 = vst [vmem:[#allocation20_spill] sm:$0xff] %v4549_v57 }
  0x90   : > { %3458 = vrot.lane.b32.xlu1 %v3457_v41, %s3887_s15  ;;  %3453 = vrot.lane.b32.xlu0 %v3452_v0, %s3887_s15  ;;  %v1033_v0 = vrot.slane %v4489_v33, 1  ;;  %vm4589_vm14 = vcmp.ne.s32.totalorder %v527_v60, 15 }
  0x92   : > { %v4556_v1 = vpop.permute.xlu1 %3188  ;;  %v4558_v41 = vpop.permute.xlu0 %3173  ;;  %v1034_v23 = vsel %vm5864_vm0, %v1031_v37, %v1033_v0  ;;  %v3497_v37 = vpack.i.bf16 %v4519_v7, %v4489_v33  ;;  %v963_v33 = vsel %vm4024_vm3, %v4017_v18, 0.0  ;;  %vm5879_vm3 = vcmask 97280  }
  0x94   : > { %3468 = vrot.lane.b32.xlu1 %v3467_v4, %s3888_s16  ;;  %3463 = vrot.lane.b32.xlu0 %v3462_v15, %s3888_s16  ;;  %v1036_v4 = vsel %vm5864_vm0, %v1033_v0, %v1035_v39  ;;  %v4585_v15 = vsub.f32 %v305_v40, %v3992_v3  ;;  %v4600_v40 = vsub.f32 %v307_v29, %v3992_v3 }
  0x95   : > { %v1250_v60 = vsel %vm4430_vm2, %v1036_v4, 0.0  ;;  %v1112_v29 = vsel %vm4589_vm14, %v1036_v4, 0.0  ;;  %vm5877_vm2 = vcmask 31744  }
  0x96   : > { %v4579_v19 = vpop.permute.xlu0 %3178  ;;  %v4581_v58 = vpop.permute.xlu1 %3193  ;;  %v1037_v27 = vrot.slane %v4585_v15, 1  ;;  %v910_v31 = vrot.slane %v4585_v15, 7  ;;  %v3492_v63 = vpack.i.bf16 %v1250_v60, %v1034_v23  ;;  %v5948_v52 = vrot.slane %v4600_v40, 7 }
  0x97   : > { %v3196_v56 = vunpack.i.h.bf16 %v4581_v58 }
  0x98   : > { %3478 = vrot.lane.b32.xlu1 %v4570_v61, %s3889_s17  ;;  %3473 = vrot.lane.b32.xlu0 %v3447_v32, %s3889_s17  ;;  %v4629_v0 = vsel %vm5864_vm0, %v1037_v27, %v5860_v49  ;;  %v4643_v24 = vsel %vm5866_vm1, %v908_v47, %v910_v31  ;;  %v1150_v49 = vsel %vm4531_vm12, %v4549_v57, 0.0  ;;  %v4656_v25 = vsel %vm5864_vm0, %v1035_v39, %v1037_v27 }
  0x99   : > { %5947 = vst [vmem:[#allocation21_spill] sm:$0xff] %v4643_v24  ;;  %v1188_v47 = vsel %vm4589_vm14, %v4629_v0, 0.0  ;;  %v4673_v39 = vsel %vm5866_vm1, %v912_v54, %v5948_v52  ;;  %v3517_v21 = vpack.i.bf16 %v4643_v24, %v1150_v49  ;;  %v4697_v49 = vpack.i.bf16 %v4600_v40, %v4573_v17 }
  0x9a   : > { %v4612_v32 = vpop.permute.xlu0 %3183  ;;  %v4614_v50 = vpop.permute.xlu1 %3198 }
  0x9b   : > { %v3186_v38 = vunpack.i.h.bf16 %v4612_v32 }
  0x9c   : > { %3488 = vrot.lane.b32.xlu1 %v3487_v34, %s3884_s21  ;;  %3483 = vrot.lane.b32.xlu0 %v3482_v20, %s3890_s18  ;;  %v3507_v34 = vpack.i.bf16 %v1112_v29, %v1034_v23  ;;  %v4636_v20 = vsel %vm5866_vm1, %v910_v31, %v912_v54  ;;  %v1186_v29 = vsel %vm4607_vm4, %v1036_v4, 0.0  ;;  %v1219_v31 = vsel %vm4456_vm9, %v4549_v57, 0.0 }
  0x9d   : > { %v4668_v4 = vpack.i.bf16 %v4585_v15, %v4519_v7  ;;  %v1221_v27 = vsel %vm4531_vm12, %v4636_v20, 0.0  ;;  %v3512_v57 = vpack.i.bf16 %v4526_v44, %v1148_v22  ;;  %v4690_v54 = vpack.i.bf16 %v1188_v47, %v4656_v25 }
  0x9e   : > { %v4638_v60 = vpop.permute.xlu1 %3208  ;;  %v4640_v48 = vpop.permute.xlu0 %3203  ;;  %v4693_v52 = vpack.i.bf16 %v4643_v24, %v1219_v31  ;;  %v3175_v22 = vunpack.i.l.bf16 %v4558_v41  ;;  %v3176_v31 = vunpack.i.h.bf16 %v4558_v41  ;;  %v3180_v24 = vunpack.i.l.bf16 %v4579_v19 }
  0x9f   : > { %v4713_v44 = vadd.s32 184, %v3987_v2  ;;  %v3206_v62 = vunpack.i.h.bf16 %v4640_v48  ;;  %v3205_v43 = vunpack.i.l.bf16 %v4640_v48  ;;  %v3211_v55 = vunpack.i.h.bf16 %v4638_v60 }
  0xa0   : > { %3498 = vrot.lane.b32.xlu1 %v3497_v37, %s3884_s21  ;;  %3493 = vrot.lane.b32.xlu0 %v3492_v63, %s3890_s18  ;;  %v4680_v37 = vpack.i.bf16 %v1186_v29, %v1034_v23  ;;  %v4683_v63 = vsub.f32 %v308_v36, %v3992_v3  ;;  %v309_v23 = vld [vmem:[%s4002_s19 + $0xb8] sm:$0xff]  ;;  %v4702_v36 = vpack.i.bf16 %v4673_v39, %v1221_v27  ;;  %v4716_v27 = vadd.s32 168, %v3987_v2 }
  0xa1   : > { %v3195_v29 = vunpack.i.l.bf16 %v4581_v58  ;;  %v4722_v47 = vsub.f32 %v309_v23, %v3992_v3  ;;  %v2190_v58 = vsel %vm5877_vm2, %v963_v33, %v3175_v22  ;;  %v2191_v41 = vsel %vm5877_vm2, %v4017_v18, %v3175_v22 }
  0xa2   : > { %v4685_v7 = vpop.permute.xlu1 %3218  ;;  %v4687_v28 = vpop.permute.xlu0 %3213  ;;  %v3201_v3 = vunpack.i.h.bf16 %v4614_v50  ;;  %v3200_v23 = vunpack.i.l.bf16 %v4614_v50  ;;  %v2193_v48 = vsel %vm5877_vm2, %v4077_v51, %v3180_v24  ;;  %v3210_v33 = vunpack.i.l.bf16 %v4638_v60 }
  0xa3   : > { %v2224_v22 = vsel %vm5878_vm8, %v2191_v41, %v3196_v56  ;;  %v2223_v50 = vsel %vm5878_vm8, %v2190_v58, %v3195_v29  ;;  %v3216_v24 = vunpack.i.h.bf16 %v4687_v28  ;;  %v3215_v60 = vunpack.i.l.bf16 %v4687_v28 }
  0xa4   : > { %3508 = vrot.lane.b32.xlu1 %v3507_v34, %s3885_s22  ;;  %3503 = vrot.lane.b32.xlu0 %v3502_v53, %s3885_s22  ;;  %v3191_v34 = vunpack.i.h.bf16 %v4556_v1  ;;  %v3190_v53 = vunpack.i.l.bf16 %v4556_v1  ;;  %v5949_v1 = vsel %vm4046_vm5, %v4063_v46, 0.0  ;;  %v3185_v46 = vunpack.i.l.bf16 %v4612_v32 }
  0xa5   : > { %v2192_v14 = vsel %vm5877_vm2, %v5949_v1, %v3176_v31  ;;  %v2257_v31 = vsel %vm5879_vm3, %v2224_v22, %v3206_v62  ;;  %v2256_v51 = vsel %vm5879_vm3, %v2223_v50, %v3205_v43  ;;  %v2226_v56 = vsel %vm5878_vm8, %v2193_v48, %v3201_v3 }
  0xa6   : > { %v4728_v59 = vpop.permute.xlu1 %3228  ;;  %v3224_v8 = vpop.permute.xlu0 %3223  ;;  %v2259_v32 = vsel %vm5879_vm3, %v2226_v56, %v3211_v55  ;;  %v3221_v43 = vunpack.i.h.bf16 %v4685_v7  ;;  %vm5950_vm2 = vcmask 130048   ;;  %vm5952_vm5 = vcmask 162816  }
  0xa7   : > { %v3226_v29 = vunpack.i.h.bf16 %v3224_v8  ;;  %v3225_v41 = vunpack.i.l.bf16 %v3224_v8  ;;  %v2289_v28 = vsel %vm5950_vm2, %v2256_v51, %v3185_v46  ;;  %vm5953_vm0 = vmmov %vm5952_vm5  ;;  %v3230_v48 = vunpack.i.l.bf16 %v4728_v59 }
  0xa8   : > { %3518 = vrot.lane.b32.xlu1 %v3517_v21, %s3886_s8  ;;  %3513 = vrot.lane.b32.xlu0 %v3512_v57, %s3886_s8  ;;  %v2225_v57 = vsel %vm5878_vm8, %v2192_v14, %v3200_v23  ;;  %v3220_v14 = vunpack.i.l.bf16 %v4685_v7  ;;  %vm5951_vm8 = vmmov %vm5950_vm2  ;;  %v2322_v3 = vsel %vm5952_vm5, %v2289_v28, %v3215_v60  ;;  %v3231_v23 = vunpack.i.h.bf16 %v4728_v59 }
  0xa9   : > { %v2258_v58 = vsel %vm5879_vm3, %v2225_v57, %v3210_v33  ;;  %v2290_v8 = vsel %vm5951_vm8, %v2257_v31, %v3186_v38  ;;  %vm5954_vm3 = vcmask 195584   ;;  %vm5958_vm5 = vmmov %vm5950_vm2  ;;  %vm5959_vm9 = vcmask 261120  }
  0xaa   : > { %v3239_v1 = vpop.permute.xlu1 %3238  ;;  %v3234_v21 = vpop.permute.xlu0 %3233  ;;  %v2323_v55 = vsel %vm5953_vm0, %v2290_v8, %v3216_v24  ;;  %v2355_v7 = vsel %vm5954_vm3, %v2322_v3, %v3225_v41  ;;  %vm5955_vm1 = vmmov %vm5954_vm3  ;;  %vm5956_vm0 = vcmask 228352   ;;  %v2291_v24 = vsel %vm5950_vm2, %v2258_v58, %v3190_v53 }
  0xab   : > { %v3236_v62 = vunpack.i.h.bf16 %v3234_v21  ;;  %v3235_v22 = vunpack.i.l.bf16 %v3234_v21  ;;  %v2356_v46 = vsel %vm5955_vm1, %v2323_v55, %v3226_v29  ;;  %v3241_v51 = vunpack.i.h.bf16 %v3239_v1  ;;  %vm5957_vm8 = vmmov %vm5956_vm0  ;;  %v310_v29 = vld [vmem:[%s4002_s19 + $0xc0] sm:$0xff] }
  0xac   : > { %3528 = vrot.lane.b32.xlu1 %v4668_v4, %s3883_s20  ;;  %3523 = vrot.lane.b32.xlu0 %v4570_v61, %s3883_s20  ;;  %v3240_v38 = vunpack.i.l.bf16 %v3239_v1  ;;  %v2292_v60 = vsel %vm5958_vm5, %v2259_v32, %v3191_v34  ;;  %vm5960_vm3 = vmmov %vm5959_vm9  ;;  %vm5961_vm1 = vcmask 162816   ;;  %v1045_v16 = vrot.slane %v4722_v47, 1 }
  0xad   : > { %v2388_v59 = vsel %vm5956_vm0, %v2355_v7, %v3235_v22  ;;  %v2389_v31 = vsel %vm5957_vm8, %v2356_v46, %v3236_v62  ;;  %v2324_v1 = vsel %vm5961_vm1, %v2291_v24, %v3220_v14  ;;  %vm5962_vm12 = vmmov %vm5961_vm1  ;;  %v380_v22 = vadd.s32 176, %v3987_v2  ;;  %v4802_v14 = vld [vmem:[%s5845_s1] ss:$0 sm:$0xff] }
  0xae   : > { %v4770_v33 = vpop.permute.xlu1 %3248  ;;  %v3244_v61 = vpop.permute.xlu0 %3243  ;;  %vm5963_vm0 = vcmask 195584   ;;  %v4805_v3 = vsub.f32 %v310_v29, %v4802_v14  ;;  %vm5968_vm5 = vmmov %vm5960_vm3  ;;  %vm5972_vm1 = vcmask 1046528   ;;  %v5975_v24 = vrot.slane %v4573_v17, 1 }
  0xaf   : > { %v3246_v50 = vunpack.i.h.bf16 %v3244_v61  ;;  %v3245_v21 = vunpack.i.l.bf16 %v3244_v61  ;;  %v2357_v62 = vsel %vm5963_vm0, %v2324_v1, %v3230_v48  ;;  %vm5964_vm8 = vmmov %vm5963_vm0  ;;  %v541_v48 = vand.u32 15, %v4716_v27  ;;  %v311_v61 = vld [vmem:[%s4002_s19 + $0xc8] sm:$0xff] }
  0xb0   : > { %3538 = vrot.lane.b32.xlu1 %v4690_v54, %s3887_s15  ;;  %3533 = vrot.lane.b32.xlu0 %v4680_v37, %s3887_s15  ;;  %v2325_v54 = vsel %vm5962_vm12, %v2292_v60, %v3221_v43  ;;  %v555_v43 = vand.u32 15, %v4713_v44  ;;  %vm5967_vm12 = vmmov %vm5960_vm3  ;;  %v548_v46 = vand.u32 15, %v380_v22  ;;  %v918_v12 = vrot.slane %v4722_v47, 7 }
  0xb1   : > { %v2421_v57 = vsel %vm5959_vm9, %v2388_v59, %v3245_v21  ;;  %v2422_v56 = vsel %vm5960_vm3, %v2389_v31, %v3246_v50  ;;  %v2358_v34 = vsel %vm5964_vm8, %v2325_v54, %v3231_v23  ;;  %vm5965_vm9 = vcmask 228352   ;;  %vm5976_vm0 = vmmov %vm5972_vm1 }
  0xb2   : > { %v4787_v41 = vpop.permute.xlu1 %3258  ;;  %v3254_v37 = vpop.permute.xlu0 %3253  ;;  %v2453_v28 = vpack.c.bf16 %v2422_v56, %v2421_v57  ;;  %v2390_v32 = vsel %vm5965_vm9, %v2357_v62, %v3240_v38  ;;  %vm5966_vm2 = vmmov %vm5965_vm9  ;;  %vm5969_vm3 = vcmask 293888   ;;  %v3567_v38 = vpack.i.bf16 %v4573_v17, %v4585_v15 }
  0xb3   : > { %v3256_v53 = vunpack.i.h.bf16 %v3254_v37  ;;  %v3255_v58 = vunpack.i.l.bf16 %v3254_v37  ;;  %v2391_v8 = vsel %vm5966_vm2, %v2358_v34, %v3241_v51  ;;  %v916_v51 = vrot.slane %v4683_v63, 7 }
  0xb4   : > { %3548 = vrot.lane.b32.xlu1 %v4702_v36, %s3888_s16  ;;  %3543 = vrot.lane.b32.xlu0 %v4693_v52, %s3888_s16  ;;  %v5970_v36 = vrot.slane %v4683_v63, 1  ;;  %v5971_v52 = vrot.slane %v4600_v40, 1  ;;  %v5973_v59 = vsel %vm4607_vm4, %v4629_v0, 0.0  ;;  %v5883_v57 = vrot.slane %v4805_v3, 1  ;;  %vm5977_vm4 = vmmov %vm5969_vm3 }
  0xb5   : > { %v2424_v55 = vsel %vm5967_vm12, %v2391_v8, %v3256_v53  ;;  %v2423_v23 = vsel %vm5968_vm5, %v2390_v32, %v3255_v58  ;;  %3070 = vmatprep.mubr.msk.bf16.mxu0 %vm5969_vm3, %v2453_v28  ;;  %v3562_v31 = vpack.i.bf16 %v5973_v59, %v4656_v25  ;;  %v4843_v56 = vsub.f32 %v311_v61, %v4802_v14  ;;  %vm5986_vm12 = vmmov %vm5976_vm0 }
  0xb6   : > { %v1044_v44 = vsel %vm5972_vm1, %v5971_v52, %v5970_v36  ;;  %v4817_v50 = vpop.permute.xlu1 %3268  ;;  %v4819_v21 = vpop.permute.xlu0 %3263  ;;  %v2454_v7 = vpack.c.bf16 %v2424_v55, %v2423_v23  ;;  %v5974_v27 = vmov %v5971_v52  ;;  %vm4846_vm8 = vcmp.ne.s32.totalorder %v555_v43, 15  ;;  %vm5990_vm1 = vmmov %vm5976_vm0 }
  0xb7   : > { %v1042_v60 = vsel %vm5976_vm0, %v5975_v24, %v5974_v27  ;;  %v1254_v15 = vsel %vm4589_vm14, %v1044_v44, 0.0  ;;  %vm4850_vm9 = vcmp.ne.s32.totalorder %v541_v48, 15  ;;  %vm4860_vm14 = vcmp.ne.s32.totalorder %v548_v46, 0 }
  0xb8   : > { %3558 = vrot.lane.b32.xlu1 %v4697_v49, %s3889_s17  ;;  %3553 = vrot.lane.b32.xlu0 %v4668_v4, %s3889_s17  ;;  %v920_v4 = vrot.slane %v4805_v3, 7  ;;  %v5984_v28 = vrot.slane %v4600_v40, 7  ;;  %vm5985_vm2 = vcmask 1040384   ;;  %v3577_v62 = vpack.i.bf16 %v4683_v63, %v4600_v40 }
  0xb9   : > { %3071 = vmatmul.mubr.msk.bf16.vlgmr.msra.gmra.mrb[0].mxu0 %vm5977_vm4, %v2454_v7  ;;  %v3572_v34 = vpack.i.bf16 %v1254_v15, %v1042_v60  ;;  %v1116_v53 = vsel %vm4846_vm8, %v1044_v44, 0.0  ;;  %v1114_v58 = vsel %vm4850_vm9, %v4629_v0, 0.0  ;;  %v4881_v32 = vsel %vm5986_vm12, %v1045_v16, %v5883_v57  ;;  %vm5987_vm5 = vmmov %vm5985_vm2 }
  0xba   : > { %v4856_v1 = vpop.permute.xlu1 %3278  ;;  %v4858_v54 = vpop.permute.xlu0 %3273  ;;  %v4867_v22 = vsel %vm5985_vm2, %v5984_v28, %v916_v51  ;;  %v5882_v40 = vrot.slane %v4843_v56, 7  ;;  %v4885_v8 = vsel %vm5987_vm5, %v916_v51, %v918_v12  ;;  %vm5988_vm3 = vmmov %vm5985_vm2  ;;  %v1152_v36 = vsel %vm4552_vm13, %v4636_v20, 0.0 }
  0xbb   : > { %v1154_v43 = vsel %vm4860_vm14, %v4867_v22, 0.0  ;;  %v4891_v55 = vsel %vm5988_vm3, %v918_v12, %v920_v4  ;;  %v4902_v52 = vpack.i.bf16 %v4722_v47, %v4683_v63  ;;  %v1190_v48 = vsel %vm4850_vm9, %v1044_v44, 0.0  ;;  %vm5991_vm0 = vmmov %vm5985_vm2 }
  0xbc   : > { %3568 = vrot.lane.b32.xlu1 %v3567_v38, %s3884_s21  ;;  %3563 = vrot.lane.b32.xlu0 %v3562_v31, %s3890_s18  ;;  %v1223_v61 = vsel %vm4552_vm13, %v4867_v22, 0.0  ;;  %v3587_v7 = vpack.i.bf16 %v1116_v53, %v1042_v60  ;;  %v3582_v46 = vpack.i.bf16 %v1114_v58, %v4656_v25  ;;  %v5989_v51 = vrot.slane %v4683_v63, 1  ;;  %v312_v31 = vld [vmem:[%s4002_s19 + $0xd0] sm:$0xff] }
  0xbd   : > { %v1192_v59 = vsel %vm4846_vm8, %v4881_v32, 0.0  ;;  %v3597_v44 = vpack.i.bf16 %v4885_v8, %v1154_v43  ;;  %v4925_v25 = vsel %vm5991_vm0, %v920_v4, %v5882_v40  ;;  %v1225_v63 = vsel %vm4860_vm14, %v4891_v55, 0.0 }
  0xbe   : > { %v4893_v23 = vpop.permute.xlu1 %3288  ;;  %v4895_v0 = vpop.permute.xlu0 %3283  ;;  %v4913_v38 = vsel %vm5990_vm1, %v5989_v51, %v1045_v16  ;;  %v3592_v27 = vpack.i.bf16 %v4673_v39, %v1152_v36  ;;  %v4931_v24 = vpack.i.bf16 %v1190_v48, %v1042_v60  ;;  %v4934_v15 = vpack.i.bf16 %v4885_v8, %v1223_v61 }
  0xbf   : > { %v4938_v16 = vpack.i.bf16 %v4843_v56, %v4805_v3  ;;  %v3181_v12 = vunpack.i.h.bf16 %v4579_v19  ;;  %v3251_v60 = vunpack.i.h.bf16 %v4770_v33  ;;  %v3260_v53 = vunpack.i.l.bf16 %v4787_v41 }
  0xc0   : > { %3578 = vrot.lane.b32.xlu1 %v3577_v62, %s3884_s21  ;;  %3573 = vrot.lane.b32.xlu0 %v3572_v34, %s3890_s18  ;;  %v4944_v62 = vpack.i.bf16 %v1192_v59, %v4913_v38  ;;  %v4947_v34 = vsub.f32 %v312_v31, %v4802_v14  ;;  %v4952_v58 = vpack.i.bf16 %v4925_v25, %v1225_v63  ;;  %v3250_v43 = vunpack.i.l.bf16 %v4770_v33 }
  0xc1   : > { %v3271_v36 = vunpack.i.h.bf16 %v4817_v50  ;;  %v3270_v48 = vunpack.i.l.bf16 %v4817_v50  ;;  %v3266_v51 = vunpack.i.h.bf16 %v4819_v21  ;;  %v3265_v59 = vunpack.i.l.bf16 %v4819_v21 }
  0xc2   : > { %v4941_v28 = vpop.permute.xlu1 %3298  ;;  %v3294_v4 = vpop.permute.xlu0 %3293  ;;  %v4966_v31 = vadd.s32 216, %v3987_v2  ;;  %v4969_v63 = vadd.s32 200, %v3987_v2  ;;  %v5992_v33 = vsel %vm4145_vm7, %v4055_v42, 0.0  ;;  %vm5993_vm4 = vcmask 31744  }
  0xc3   : > { %v2194_v50 = vsel %vm5993_vm4, %v5992_v33, %v3181_v12  ;;  %v5994_v19 = vsel %vm4137_vm6, %v4107_v6, 0.0  ;;  %vm5995_vm2 = vmmov %vm5993_vm4  ;;  %v3276_v30 = vunpack.i.h.bf16 %v4858_v54  ;;  %v3275_v12 = vunpack.i.l.bf16 %v4858_v54 }
  0xc4   : > { %3588 = vrot.lane.b32.xlu1 %v3587_v7, %s3885_s22  ;;  %3583 = vrot.lane.b32.xlu0 %v3582_v46, %s3885_s22  ;;  %v3281_v7 = vunpack.i.h.bf16 %v4856_v1  ;;  %v3280_v46 = vunpack.i.l.bf16 %v4856_v1  ;;  %v2196_v61 = vsel %vm5995_vm2, %v5994_v19, %v3251_v60  ;;  %vm5996_vm12 = vmmov %vm5995_vm2  ;;  %vm5998_vm5 = vcmask 64512  }
  0xc5   : > { %v2197_v42 = vsel %vm5996_vm12, %v4119_v13, %v3260_v53  ;;  %vm5997_vm7 = vmmov %vm5995_vm2  ;;  %v2229_v33 = vsel %vm5998_vm5, %v2196_v61, %v3270_v48  ;;  %v4997_v6 = vadd.s32 208, %v3987_v2  ;;  %v3286_v54 = vunpack.i.h.bf16 %v4895_v0 }
  0xc6   : > { %v4978_v40 = vpop.permute.xlu1 %3308  ;;  %v3304_v57 = vpop.permute.xlu0 %3303  ;;  %v2195_v1 = vsel %vm5997_vm7, %v4059_v45, %v3250_v43  ;;  %vm5999_vm3 = vmmov %vm5998_vm5  ;;  %v3285_v60 = vunpack.i.l.bf16 %v4895_v0  ;;  %vm6002_vm0 = vcmask 97280   ;;  %v3296_v19 = vunpack.i.h.bf16 %v3294_v4 }
  0xc7   : > { %v2230_v21 = vsel %vm5999_vm3, %v2197_v42, %v3271_v36  ;;  %vm6000_vm6 = vmmov %vm5999_vm3  ;;  %v2262_v45 = vsel %vm6002_vm0, %v2229_v33, %v3280_v46  ;;  %v3295_v43 = vunpack.i.l.bf16 %v3294_v4  ;;  %v3306_v61 = vunpack.i.h.bf16 %v3304_v57 }
  0xc8   : > { %3598 = vrot.lane.b32.xlu1 %v3597_v44, %s3886_s8  ;;  %3593 = vrot.lane.b32.xlu0 %v3592_v27, %s3886_s8  ;;  %v2228_v13 = vsel %vm6000_vm6, %v2195_v1, %v3266_v51  ;;  %vm6001_vm1 = vmmov %vm5999_vm3  ;;  %v3305_v51 = vunpack.i.l.bf16 %v3304_v57  ;;  %vm6006_vm7 = vcmask 130048   ;;  %v3301_v46 = vunpack.i.h.bf16 %v4941_v28 }
  0xc9   : > { %v2227_v26 = vsel %vm6001_vm1, %v2194_v50, %v3265_v59  ;;  %vm6003_vm4 = vmmov %vm6002_vm0  ;;  %v3291_v59 = vunpack.i.h.bf16 %v4893_v23  ;;  %v3290_v50 = vunpack.i.l.bf16 %v4893_v23  ;;  %v3300_v57 = vunpack.i.l.bf16 %v4941_v28 }
  0xca   : > { %v2263_v53 = vsel %vm6003_vm4, %v2230_v21, %v3281_v7  ;;  %v3319_v44 = vpop.permute.xlu1 %3318  ;;  %v3314_v36 = vpop.permute.xlu0 %3313  ;;  %vm6004_vm2 = vmmov %vm6002_vm0  ;;  %vm6008_vm3 = vcmask 162816   ;;  %vm6010_vm1 = vcmask 195584   ;;  %vm6012_vm4 = vcmask 228352  }
  0xcb   : > { %v2260_v27 = vsel %vm6004_vm2, %v2227_v26, %v3275_v12  ;;  %vm6005_vm12 = vmmov %vm6002_vm0  ;;  %v3316_v42 = vunpack.i.h.bf16 %v3314_v36  ;;  %v3315_v0 = vunpack.i.l.bf16 %v3314_v36  ;;  %v3310_v12 = vunpack.i.l.bf16 %v4978_v40 }
  0xcc   : > { %v2261_v48 = vsel %vm6005_vm12, %v2228_v13, %v3276_v30  ;;  %3608 = vrot.lane.b32.xlu1 %v4902_v52, %s3883_s20  ;;  %3603 = vrot.lane.b32.xlu0 %v4697_v49, %s3883_s20  ;;  %v2293_v4 = vsel %vm6006_vm7, %v2260_v27, %v3285_v60  ;;  %vm6007_vm5 = vmmov %vm6006_vm7  ;;  %v3311_v30 = vunpack.i.h.bf16 %v4978_v40  ;;  %v3321_v60 = vunpack.i.h.bf16 %v3319_v44 }
  0xcd   : > { %v2294_v7 = vsel %vm6007_vm5, %v2261_v48, %v3286_v54  ;;  %v2326_v21 = vsel %vm6008_vm3, %v2293_v4, %v3295_v43  ;;  %vm6009_vm6 = vmmov %vm6008_vm3  ;;  %v3320_v28 = vunpack.i.l.bf16 %v3319_v44 }
  0xce   : > { %v2327_v23 = vsel %vm6009_vm6, %v2294_v7, %v3296_v19  ;;  %v5021_v1 = vpop.permute.xlu1 %3328  ;;  %v3324_v33 = vpop.permute.xlu0 %3323  ;;  %v2359_v49 = vsel %vm6010_vm1, %v2326_v21, %v3305_v51  ;;  %vm6011_vm0 = vmmov %vm6010_vm1 }
  0xcf   : > { %v2360_v13 = vsel %vm6011_vm0, %v2327_v23, %v3306_v61  ;;  %v3326_v26 = vunpack.i.h.bf16 %v3324_v33  ;;  %v3325_v54 = vunpack.i.l.bf16 %v3324_v33  ;;  %v2392_v43 = vsel %vm6012_vm4, %v2359_v49, %v3315_v0  ;;  %vm6013_vm2 = vmmov %vm6012_vm4 }
  0xd0   : > { %v2393_v19 = vsel %vm6013_vm2, %v2360_v13, %v3316_v42  ;;  %3618 = vrot.lane.b32.xlu1 %v4944_v62, %s3887_s15  ;;  %3613 = vrot.lane.b32.xlu0 %v4931_v24, %s3887_s15  ;;  %vm6014_vm12 = vmmov %vm6007_vm5  ;;  %v583_v0 = vand.u32 15, %v4966_v31  ;;  %v314_v24 = vld [vmem:[%s4002_s19 + $0xe0] sm:$0xff]  ;;  %v569_v31 = vand.u32 15, %v4969_v63 }
  0xd1   : > { %v2295_v40 = vsel %vm6014_vm12, %v2262_v45, %v3290_v50  ;;  %vm6015_vm7 = vmmov %vm6007_vm5  ;;  %vm6016_vm5 = vcmask 261120   ;;  %v313_v50 = vld [vmem:[%s4002_s19 + $0xd8] sm:$0xff] }
  0xd2   : > { %v2296_v36 = vsel %vm6015_vm7, %v2263_v53, %v3291_v59  ;;  %v2425_v27 = vsel %vm6016_vm5, %v2392_v43, %v3325_v54  ;;  %vm6017_vm3 = vmmov %vm6016_vm5  ;;  %v2328_v44 = vsel %vm6009_vm6, %v2295_v40, %v3300_v57  ;;  %v5037_v51 = vpop.permute.xlu1 %3338  ;;  %v3334_v42 = vpop.permute.xlu0 %3333  ;;  %v5071_v54 = vsub.f32 %v313_v50, %v4802_v14 }
  0xd3   : > { %v2426_v48 = vsel %vm6017_vm3, %v2393_v19, %v3326_v26  ;;  %vm6018_vm1 = vmmov %vm6009_vm6  ;;  %v2361_v4 = vsel %vm6011_vm0, %v2328_v44, %v3310_v12  ;;  %v3336_v53 = vunpack.i.h.bf16 %v3334_v42  ;;  %v3335_v59 = vunpack.i.l.bf16 %v3334_v42 }
  0xd4   : > { %v2329_v61 = vsel %vm6018_vm1, %v2296_v36, %v3301_v46  ;;  %v2455_v62 = vpack.c.bf16 %v2426_v48, %v2425_v27  ;;  %vm6019_vm4 = vmmov %vm6011_vm0  ;;  %v2394_v7 = vsel %vm6013_vm2, %v2361_v4, %v3320_v28  ;;  %3628 = vrot.lane.b32.xlu1 %v4952_v58, %s3888_s16  ;;  %3623 = vrot.lane.b32.xlu0 %v4934_v15, %s3888_s16  ;;  %v382_v46 = vadd.s32 192, %v3987_v2  ;;  %v315_v15 = vld [vmem:[%s4002_s19 + $0xe8] sm:$0xff] }
  0xd5   : > { %v2362_v45 = vsel %vm6019_vm4, %v2329_v61, %v3311_v30  ;;  %vm6020_vm12 = vmmov %vm6013_vm2  ;;  %v6024_v30 = vrot.slane %v4947_v34, 1  ;;  %v6025_v12 = vrot.slane %v4843_v56, 1  ;;  %vm6026_vm6 = vcmask 1046528  }
  0xd6   : > { %v2395_v57 = vsel %vm6020_vm12, %v2362_v45, %v3321_v60  ;;  %vm6021_vm7 = vmmov %vm6017_vm3  ;;  %v5061_v58 = vsub.f32 %v314_v24, %v4802_v14  ;;  %v5064_v63 = vpop.permute.xlu1 %3348  ;;  %v5066_v13 = vpop.permute.xlu0 %3343  ;;  %v3647_v26 = vpack.i.bf16 %v4805_v3, %v4722_v47  ;;  %v6027_v60 = vsel %vm4850_vm9, %v4881_v32, 0.0 }
  0xd7   : > { %v2428_v21 = vsel %vm6021_vm7, %v2395_v57, %v3336_v53  ;;  %vm6022_vm5 = vmmov %vm6017_vm3  ;;  %vm6023_vm3 = vcmask 293888   ;;  %v1052_v33 = vsel %vm6026_vm6, %v6025_v12, %v6024_v30  ;;  %v3642_v28 = vpack.i.bf16 %v6027_v60, %v4913_v38 }
  0xd8   : > { %v2427_v23 = vsel %vm6022_vm5, %v2394_v7, %v3335_v59  ;;  %3074 = vmatprep.mubr.msk.bf16.mxu0 %vm6023_vm3, %v2455_v62  ;;  %v6028_v43 = vmov %v6025_v12  ;;  %v6029_v19 = vrot.slane %v4805_v3, 1  ;;  %vm6030_vm1 = vmmov %vm6026_vm6  ;;  %v576_v36 = vand.u32 15, %v4997_v6  ;;  %3638 = vrot.lane.b32.xlu1 %v4938_v16, %s3889_s17 }
  0xd9   : > { %v2456_v49 = vpack.c.bf16 %v2428_v21, %v2427_v23  ;;  %v924_v27 = vrot.slane %v4947_v34, 7  ;;  %3633 = vrot.lane.b32.xlu0 %v4902_v52, %s3889_s17  ;;  %v1258_v47 = vsel %vm4846_vm8, %v1052_v33, 0.0  ;;  %vm5091_vm9 = vcmp.ne.s32.totalorder %v583_v0, 15  ;;  %vm6033_vm0 = vmmov %vm6023_vm3 }
  0xda   : > { %v1050_v40 = vsel %vm6030_vm1, %v6029_v19, %v6028_v43  ;;  %v562_v3 = vand.u32 15, %v382_v46  ;;  %v5096_v48 = vsub.f32 %v315_v15, %v4802_v14  ;;  %vm5099_vm4 = vcmp.ne.s32.totalorder %v569_v31, 15  ;;  %v5106_v61 = vpop.permute.xlu1 %3358  ;;  %v5108_v42 = vpop.permute.xlu0 %3353  ;;  %vm6042_vm7 = vmmov %vm6030_vm1 }
  0xdb   : > { %3075 = vmatmul.mubr.msk.bf16.gmra.mrb[4].mxu0 %vm6033_vm0, %v2456_v49  ;;  %v1053_v44 = vrot.slane %v5071_v54, 1  ;;  %v5885_v52 = vrot.slane %v5061_v58, 1  ;;  %v928_v17 = vrot.slane %v5061_v58, 7  ;;  %v926_v62 = vrot.slane %v5071_v54, 7  ;;  %vm6047_vm6 = vmmov %vm6030_vm1 }
  0xdc   : > { %v3657_v0 = vpack.i.bf16 %v4947_v34, %v4843_v56  ;;  %v3652_v24 = vpack.i.bf16 %v1258_v47, %v1050_v40  ;;  %vm5113_vm8 = vcmp.ne.s32.totalorder %v576_v36, 0  ;;  %v6038_v45 = vrot.slane %v4843_v56, 7  ;;  %3648 = vrot.lane.b32.xlu1 %v3647_v26, %s3884_s21 }
  0xdd   : > { %vm6039_vm2 = vcmask 1040384   ;;  %3643 = vrot.lane.b32.xlu0 %v3642_v28, %s3890_s18  ;;  %v1120_v59 = vsel %vm5091_vm9, %v1052_v33, 0.0  ;;  %v1118_v50 = vsel %vm5099_vm4, %v4881_v32, 0.0  ;;  %vm5129_vm12 = vcmp.ne.s32.totalorder %v562_v3, 0 }
  0xde   : > { %v5120_v53 = vsel %vm6039_vm2, %v6038_v45, %v924_v27  ;;  %v5884_v56 = vrot.slane %v5096_v48, 7  ;;  %v5137_v57 = vsel %vm6042_vm7, %v1053_v44, %v5885_v52  ;;  %vm6043_vm5 = vmmov %vm6039_vm2  ;;  %v5142_v46 = vpop.permute.xlu1 %3368  ;;  %v5144_v21 = vpop.permute.xlu0 %3363  ;;  %v1194_v30 = vsel %vm5099_vm4, %v1052_v33, 0.0 }
  0xdf   : > { %v5140_v31 = vsel %vm6043_vm5, %v926_v62, %v928_v17  ;;  %vm6044_vm3 = vmmov %vm6039_vm2  ;;  %v1158_v23 = vsel %vm5113_vm8, %v5120_v53, 0.0  ;;  %v3667_v12 = vpack.i.bf16 %v1120_v59, %v1050_v40  ;;  %v3662_v15 = vpack.i.bf16 %v1118_v50, %v4913_v38 }
  0xe0   : > { %v5147_v32 = vsel %vm6044_vm3, %v924_v27, %v926_v62  ;;  %v1156_v49 = vsel %vm5129_vm12, %v4891_v55, 0.0  ;;  %v1227_v26 = vsel %vm5129_vm12, %v5120_v53, 0.0  ;;  %3658 = vrot.lane.b32.xlu1 %v3657_v0, %s3884_s21  ;;  %v6046_v60 = vrot.slane %v4947_v34, 1  ;;  %vm6048_vm1 = vmmov %vm6039_vm2  ;;  %v316_v0 = vld [vmem:[%s4002_s19 + $0xf0] sm:$0xff] }
  0xe1   : > { %6045 = vst [vmem:[#allocation22_spill] sm:$0xff] %v5147_v32  ;;  %3653 = vrot.lane.b32.xlu0 %v3652_v24, %s3890_s18  ;;  %v1196_v38 = vsel %vm5091_vm9, %v5137_v57, 0.0  ;;  %v5174_v28 = vsel %vm6048_vm1, %v928_v17, %v5884_v56  ;;  %v1229_v43 = vsel %vm5113_vm8, %v5140_v31, 0.0  ;;  %v3677_v19 = vpack.i.bf16 %v5147_v32, %v1158_v23  ;;  %v6053_v56 = vld [vmem:[#allocation7_spill] sm:$0xff] }
  0xe2   : > { %v5166_v33 = vsel %vm6047_vm6, %v6046_v60, %v1053_v44  ;;  %v5182_v36 = vpack.i.bf16 %v5071_v54, %v4947_v34  ;;  %v5184_v27 = vpack.i.bf16 %v1194_v30, %v1050_v40  ;;  %v3261_v47 = vunpack.i.h.bf16 %v4787_v41  ;;  %v5187_v3 = vpop.permute.xlu1 %3378  ;;  %v3374_v44 = vpop.permute.xlu0 %3373 }
  0xe3   : > { %v3672_v17 = vpack.i.bf16 %v4925_v25, %v1156_v49  ;;  %v5191_v62 = vpack.i.bf16 %v5147_v32, %v1227_v26  ;;  %v3331_v24 = vunpack.i.h.bf16 %v5021_v1  ;;  %v3340_v45 = vunpack.i.l.bf16 %v5037_v51 }
  0xe4   : > { %v5197_v34 = vpack.i.bf16 %v1196_v38, %v5166_v33  ;;  %v5200_v40 = vpack.i.bf16 %v5174_v28, %v1229_v43  ;;  %v3330_v41 = vunpack.i.l.bf16 %v5021_v1  ;;  %v3351_v59 = vunpack.i.h.bf16 %v5064_v63  ;;  %3668 = vrot.lane.b32.xlu1 %v3667_v12, %s3885_s22 }
  0xe5   : > { %v3350_v50 = vunpack.i.l.bf16 %v5064_v63  ;;  %3663 = vrot.lane.b32.xlu0 %v3662_v15, %s3885_s22  ;;  %v3346_v30 = vunpack.i.h.bf16 %v5066_v13  ;;  %v3345_v49 = vunpack.i.l.bf16 %v5066_v13  ;;  %v5211_v26 = vsub.f32 %v316_v0, %v4802_v14 }
  0xe6   : > { %v5214_v60 = vadd.s32 248, %v3987_v2  ;;  %v6049_v1 = vsel %vm4226_vm11, %v4211_v9, 0.0  ;;  %vm6050_vm0 = vcmask 31744   ;;  %v3361_v12 = vunpack.i.h.bf16 %v5106_v61  ;;  %v5223_v38 = vpop.permute.xlu1 %3388  ;;  %v3384_v43 = vpop.permute.xlu0 %3383 }
  0xe7   : > { %v2198_v63 = vsel %vm6050_vm0, %v6049_v1, %v3261_v47  ;;  %v3360_v15 = vunpack.i.l.bf16 %v5106_v61  ;;  %v5226_v13 = vadd.s32 232, %v3987_v2  ;;  %v6051_v0 = vsel %vm4216_vm10, %v4214_v10, 0.0  ;;  %vm6052_vm2 = vmmov %vm6050_vm0  ;;  %v6055_v61 = vld [vmem:[#allocation6_spill] sm:$0xff] }
  0xe8   : > { %v2200_v5 = vsel %vm6052_vm2, %v6051_v0, %v3331_v24  ;;  %vm6054_vm11 = vmmov %vm6050_vm0  ;;  %v3356_v47 = vunpack.i.h.bf16 %v5108_v42  ;;  %v3355_v1 = vunpack.i.l.bf16 %v5108_v42  ;;  %vm6057_vm5 = vcmask 64512   ;;  %3678 = vrot.lane.b32.xlu1 %v3677_v19, %s3886_s8 }
  0xe9   : > { %v2201_v9 = vsel %vm6054_vm11, %v6053_v56, %v3340_v45  ;;  %vm6056_vm7 = vmmov %vm6050_vm0  ;;  %v2233_v23 = vsel %vm6057_vm5, %v2200_v5, %v3350_v50  ;;  %3673 = vrot.lane.b32.xlu0 %v3672_v17, %s3886_s8  ;;  %v5244_v10 = vadd.s32 240, %v3987_v2  ;;  %v3366_v42 = vunpack.i.h.bf16 %v5144_v21 }
  0xea   : > { %v2199_v52 = vsel %vm6056_vm7, %v6055_v61, %v3330_v41  ;;  %vm6058_vm3 = vmmov %vm6057_vm5  ;;  %v3365_v24 = vunpack.i.l.bf16 %v5144_v21  ;;  %vm6061_vm1 = vcmask 97280   ;;  %v3375_v50 = vunpack.i.l.bf16 %v3374_v44  ;;  %v3399_v19 = vpop.permute.xlu1 %3398  ;;  %v3394_v0 = vpop.permute.xlu0 %3393 }
  0xeb   : > { %v2234_v32 = vsel %vm6058_vm3, %v2201_v9, %v3351_v59  ;;  %vm6059_vm10 = vmmov %vm6058_vm3  ;;  %v2266_v45 = vsel %vm6061_vm1, %v2233_v23, %v3360_v15  ;;  %v3376_v59 = vunpack.i.h.bf16 %v3374_v44  ;;  %v3386_v9 = vunpack.i.h.bf16 %v3384_v43 }
  0xec   : > { %v2232_v11 = vsel %vm6059_vm10, %v2199_v52, %v3346_v30  ;;  %vm6060_vm6 = vmmov %vm6058_vm3  ;;  %v3385_v52 = vunpack.i.l.bf16 %v3384_v43  ;;  %v3371_v30 = vunpack.i.h.bf16 %v5142_v46  ;;  %v3395_v21 = vunpack.i.l.bf16 %v3394_v0  ;;  %3688 = vrot.lane.b32.xlu1 %v5182_v36, %s3883_s20 }
  0xed   : > { %v2231_v56 = vsel %vm6060_vm6, %v2198_v63, %v3345_v49  ;;  %vm6062_vm0 = vmmov %vm6061_vm1  ;;  %v3370_v49 = vunpack.i.l.bf16 %v5142_v46  ;;  %v3396_v63 = vunpack.i.h.bf16 %v3394_v0  ;;  %3683 = vrot.lane.b32.xlu0 %v4938_v16, %s3883_s20  ;;  %vm6065_vm7 = vcmask 130048  }
  0xee   : > { %v2267_v41 = vsel %vm6062_vm0, %v2234_v32, %v3361_v12  ;;  %vm6063_vm2 = vmmov %vm6062_vm0  ;;  %v3381_v23 = vunpack.i.h.bf16 %v5187_v3  ;;  %v3380_v12 = vunpack.i.l.bf16 %v5187_v3  ;;  %vm6067_vm3 = vcmask 162816   ;;  %v3404_v61 = vpop.permute.xlu0 %3403 }
  0xef   : > { %v2264_v17 = vsel %vm6063_vm2, %v2231_v56, %v3355_v1  ;;  %vm6064_vm11 = vmmov %vm6062_vm0  ;;  %v3391_v43 = vunpack.i.h.bf16 %v5223_v38  ;;  %v5268_v1 = vpop.permute.xlu1 %3408  ;;  %vm6069_vm6 = vcmask 195584   ;;  %v3406_v56 = vunpack.i.h.bf16 %v3404_v61 }
  0xf0   : > { %v2265_v5 = vsel %vm6064_vm11, %v2232_v11, %v3356_v47  ;;  %v2297_v32 = vsel %vm6065_vm7, %v2264_v17, %v3365_v24  ;;  %vm6066_vm5 = vmmov %vm6065_vm7  ;;  %v3390_v47 = vunpack.i.l.bf16 %v5223_v38  ;;  %v3401_v24 = vunpack.i.h.bf16 %v3399_v19  ;;  %3698 = vrot.lane.b32.xlu1 %v5197_v34, %s3887_s15 }
  0xf1   : > { %v2298_v44 = vsel %vm6066_vm5, %v2265_v5, %v3366_v42  ;;  %v2330_v15 = vsel %vm6067_vm3, %v2297_v32, %v3375_v50  ;;  %vm6068_vm10 = vmmov %vm6067_vm3  ;;  %v3405_v42 = vunpack.i.l.bf16 %v3404_v61  ;;  %v3400_v3 = vunpack.i.l.bf16 %v3399_v19  ;;  %3693 = vrot.lane.b32.xlu0 %v5184_v27, %s3887_s15  ;;  %v317_v32 = vld [vmem:[%s4002_s19 + $0xf8] sm:$0xff] }
  0xf2   : > { %v2331_v46 = vsel %vm6068_vm10, %v2298_v44, %v3376_v59  ;;  %v2363_v16 = vsel %vm6069_vm6, %v2330_v15, %v3385_v52  ;;  %vm6070_vm1 = vmmov %vm6069_vm6  ;;  %vm6071_vm0 = vcmask 228352   ;;  %v1059_v34 = vrot.slane %v5211_v26, 1 }
  0xf3   : > { %v2364_v11 = vsel %vm6070_vm1, %v2331_v46, %v3386_v9  ;;  %v2396_v50 = vsel %vm6071_vm0, %v2363_v16, %v3395_v21  ;;  %vm6072_vm2 = vmmov %vm6071_vm0  ;;  %v3414_v21 = vpop.permute.xlu0 %3413  ;;  %v6083_v6 = vrot.slane %v5096_v48, 1  ;;  %v6095_v29 = vrot.slane %v5096_v48, 7 }
  0xf4   : > { %v2397_v59 = vsel %vm6072_vm2, %v2364_v11, %v3396_v63  ;;  %vm6073_vm11 = vmmov %vm6066_vm5  ;;  %v5284_v63 = vpop.permute.xlu1 %3418  ;;  %3708 = vrot.lane.b32.xlu1 %v5200_v40, %s3888_s16  ;;  %v386_v40 = vadd.s32 224, %v3987_v2  ;;  %v611_v11 = vand.u32 15, %v5214_v60  ;;  %v3727_v2 = vpack.i.bf16 %v5061_v58, %v5071_v54 }
  0xf5   : > { %v2299_v38 = vsel %vm6073_vm11, %v2266_v45, %v3370_v49  ;;  %vm6074_vm7 = vmmov %vm6066_vm5  ;;  %vm6075_vm5 = vcmask 261120   ;;  %3703 = vrot.lane.b32.xlu0 %v5191_v62, %s3888_s16  ;;  %v6086_v60 = vmov %v6083_v6 }
  0xf6   : > { %v2300_v0 = vsel %vm6074_vm7, %v2267_v41, %v3371_v30  ;;  %v2429_v17 = vsel %vm6075_vm5, %v2396_v50, %v3405_v42  ;;  %vm6076_vm3 = vmmov %vm6075_vm5  ;;  %v2332_v19 = vsel %vm6068_vm10, %v2299_v38, %v3380_v12  ;;  %v3416_v41 = vunpack.i.h.bf16 %v3414_v21 }
  0xf7   : > { %v2430_v5 = vsel %vm6076_vm3, %v2397_v59, %v3406_v56  ;;  %vm6077_vm6 = vmmov %vm6068_vm10  ;;  %v2365_v27 = vsel %vm6070_vm1, %v2332_v19, %v3390_v47  ;;  %v3415_v30 = vunpack.i.l.bf16 %v3414_v21  ;;  %v1260_v12 = vsel %vm5099_vm4, %v5137_v57, 0.0  ;;  %v5310_v61 = vpop.permute.xlu0 %3423 }
  0xf8   : > { %v2333_v9 = vsel %vm6077_vm6, %v2300_v0, %v3381_v23  ;;  %v2457_v52 = vpack.c.bf16 %v2430_v5, %v2429_v17  ;;  %vm6078_vm0 = vmmov %vm6070_vm1  ;;  %v2398_v49 = vsel %vm6072_vm2, %v2365_v27, %v3400_v3  ;;  %v5298_v23 = vpack.i.bf16 %v5096_v48, %v5061_v58  ;;  %v5308_v62 = vpop.permute.xlu1 %3428 }
  0xf9   : > { %v2366_v45 = vsel %vm6078_vm0, %v2333_v9, %v3391_v43  ;;  %vm6079_vm11 = vmmov %vm6072_vm2  ;;  %v356_v43 = vsub.f32 %v317_v32, %v4802_v14  ;;  %vm6084_vm4 = vcmask 1046528   ;;  %v597_v56 = vand.u32 15, %v5226_v13  ;;  %3713 = vrot.lane.b32.xlu0 %v5182_v36, %s3889_s17 }
  0xfa   : > { %v2399_v44 = vsel %vm6079_vm11, %v2366_v45, %v3401_v24  ;;  %vm6080_vm7 = vmmov %vm6076_vm3  ;;  %v1060_v16 = vsel %vm6084_vm4, %v6083_v6, %v1059_v34  ;;  %v604_v42 = vand.u32 15, %v5244_v10  ;;  %v1126_v14 = vrot.slane %v5211_v26, 7  ;;  %3718 = vrot.lane.b32.xlu1 %v5298_v23, %s3889_s17 }
  0xfb   : > { %v2432_v15 = vsel %vm6080_vm7, %v2399_v44, %v3416_v41  ;;  %vm6081_vm5 = vmmov %vm6076_vm3  ;;  %vm6082_vm3 = vcmask 293888   ;;  %v3722_v24 = vpack.i.bf16 %v1260_v12, %v5166_v33  ;;  %v6087_v13 = vrot.slane %v5061_v58, 1  ;;  %v5338_v36 = vpop.permute.xlu0 %3433 }
  0xfc   : > { %v2431_v46 = vsel %vm6081_vm5, %v2398_v49, %v3415_v30  ;;  %3078 = vmatprep.mubr.msk.bf16.mxu0 %vm6082_vm3, %v2457_v52  ;;  %vm6085_vm10 = vmmov %vm6082_vm3  ;;  %v1262_v3 = vsel %vm5091_vm9, %v1060_v16, 0.0  ;;  %v590_v50 = vand.u32 15, %v386_v40  ;;  %v5336_v59 = vpop.permute.xlu1 %3438  ;;  %vm5340_vm1 = vcmp.ne.s32.totalorder %v611_v11, 15  ;;  %v6100_v30 = vld [vmem:[#allocation5_spill] sm:$0xff] }
  0xfd   : > { %v2458_v47 = vpack.c.bf16 %v2432_v15, %v2431_v46  ;;  %vm6088_vm6 = vmmov %vm6084_vm4  ;;  %vm5344_vm0 = vcmp.ne.s32.totalorder %v597_v56, 15  ;;  %v1128_v0 = vrot.slane %v356_v43, 7  ;;  %vm5348_vm2 = vcmp.ne.s32.totalorder %v604_v42, 0  ;;  %3723 = vrot.lane.b32.xlu0 %v3722_v24, %s3890_s18 }
  0xfe   : > { %v1058_v10 = vsel %vm6088_vm6, %v6087_v13, %v6086_v60  ;;  %vm6096_vm9 = vcmask 1040384   ;;  %v1164_v5 = vrot.slane %v356_v43, 1  ;;  %3728 = vrot.lane.b32.xlu1 %v3727_v2, %s3884_s21  ;;  %v1124_v9 = vsel %vm5340_vm1, %v1060_v16, 0.0  ;;  %vm6101_vm5 = vmmov %vm6084_vm4 }
  0xff   : > { %3079 = vmatmul.mubr.msk.bf16.gmra.mrb[8].mxu0 %vm6085_vm10, %v2458_v47  ;;  %v1127_v17 = vsel %vm6096_vm9, %v6095_v29, %v1126_v14  ;;  %v3732_v19 = vpack.i.bf16 %v1262_v3, %v1058_v10  ;;  %v1122_v52 = vsel %vm5344_vm0, %v5137_v57, 0.0  ;;  %vm5362_vm11 = vcmp.ne.s32.totalorder %v590_v50, 0  ;;  %v5368_v27 = vpop.permute.xlu0 %3443  ;;  %vm6099_vm7 = vmmov %vm6096_vm9 }
 0x100   : > { %v5366_v32 = vpop.permute.xlu1 %3448  ;;  %v1129_v45 = vsel %vm6099_vm7, %v1126_v14, %v1128_v0  ;;  %v1162_v41 = vsel %vm5348_vm2, %v1127_v17, 0.0  ;;  %v5375_v49 = vsel %vm6101_vm5, %v1164_v5, %v6100_v30  ;;  %vm6102_vm3 = vmmov %vm6099_vm7  ;;  %v3742_v44 = vpack.i.bf16 %v1124_v9, %v1058_v10 }
 0x101   : > { %v1201_v57 = vsel %vm6102_vm3, %v1128_v0, %v4017_v18  ;;  %3733 = vrot.lane.b32.xlu0 %v3732_v19, %s3890_s18  ;;  %v3737_v12 = vpack.i.bf16 %v1122_v52, %v5166_v33  ;;  %v1160_v15 = vsel %vm5362_vm11, %v5140_v31, 0.0  ;;  %v3752_v46 = vpack.i.bf16 %v1129_v45, %v1162_v41  ;;  %v6109_v52 = vld [vmem:[#allocation10_spill] sm:$0xff] }
 0x102   : > { %1327 = vrot.lane.b32.xlu1 %v5096_v48, %s3884_s21  ;;  %v5387_v40 = vpack.i.bf16 %v356_v43, %v5211_v26  ;;  %v1198_v47 = vsel %vm5344_vm0, %v1060_v16, 0.0  ;;  %v3341_v6 = vunpack.i.h.bf16 %v5037_v51  ;;  %v5397_v33 = vsel %vm6084_vm4, %v1059_v34, %v1164_v5  ;;  %s5802_s21 = scalar_lea.hbm %s5851_s7, %s3032_s29 }
 0x103   : > { %v3454_v48 = vpop.permute.xlu0 %3453  ;;  %v1200_v56 = vsel %vm5340_vm1, %v5375_v49, 0.0  ;;  %v1233_v43 = vsel %vm5348_vm2, %v1201_v57, 0.0  ;;  %v3411_v42 = vunpack.i.h.bf16 %v5268_v1  ;;  %v3420_v16 = vunpack.i.l.bf16 %v5284_v63  ;;  %v6112_v57 = vld [vmem:[#allocation11_spill] sm:$0xff] }
 0x104   : > { %v5392_v11 = vpop.permute.xlu1 %3458  ;;  %v3747_v51 = vpack.i.bf16 %v5174_v28, %v1160_v15  ;;  %v1231_v14 = vsel %vm5362_vm11, %v1127_v17, 0.0  ;;  %v3410_v26 = vunpack.i.l.bf16 %v5268_v1  ;;  %v3431_v34 = vunpack.i.h.bf16 %v5308_v62  ;;  %v6104_v1 = vld [vmem:[#allocation8_spill] sm:$0xff] }
 0x105   : > { %v3430_v2 = vunpack.i.l.bf16 %v5308_v62  ;;  %3738 = vrot.lane.b32.xlu0 %v3737_v12, %s3885_s22  ;;  %v3767_v24 = vpack.i.bf16 %v1198_v47, %v1058_v10  ;;  %v3426_v60 = vunpack.i.h.bf16 %v5310_v61  ;;  %v3425_v13 = vunpack.i.l.bf16 %v5310_v61  ;;  %v6107_v61 = vld [vmem:[#allocation13_spill] sm:$0xff] }
 0x106   : > { %3743 = vrot.lane.b32.xlu1 %v3742_v44, %s3885_s22  ;;  %v3772_v3 = vpack.i.bf16 %v1200_v56, %v5397_v33  ;;  %v5418_v50 = vpack.i.bf16 %v4017_v18, %v1233_v43  ;;  %v6105_v29 = vsel %vm4387_vm15, %v6104_v1, 0.0  ;;  %vm6106_vm10 = vcmask 31744   ;;  %v6114_v47 = vld [vmem:[#allocation9_spill] sm:$0xff]  ;;  %s2908_s22 = scalar_lea.sflag [#allocation3], %s275_s13 }
 0x107   : > { %v2202_v62 = vsel %vm6106_vm10, %v6105_v29, %v3341_v6  ;;  %v3441_v17 = vunpack.i.h.bf16 %v5336_v59  ;;  %v3440_v5 = vunpack.i.l.bf16 %v5336_v59  ;;  %v3464_v19 = vpop.permute.xlu0 %3463  ;;  %v5429_v9 = vpack.i.bf16 %v1129_v45, %v1231_v14  ;;  %vm6111_vm9 = vmmov %vm6106_vm10 }
 0x108   : > { %v5427_v10 = vpop.permute.xlu1 %3468  ;;  %vm6108_vm6 = vnez %v6107_v61  ;;  %vm6113_vm7 = vmmov %vm6111_vm9  ;;  %v3436_v12 = vunpack.i.h.bf16 %v5338_v36  ;;  %v3435_v15 = vunpack.i.l.bf16 %v5338_v36  ;;  %vm6116_vm5 = vcmask 64512  }
 0x109   : > { %v6110_v18 = vsel %vm6108_vm6, %v6109_v52, 0.0  ;;  %v2205_v44 = vsel %vm6113_vm7, %v6112_v57, %v3420_v16  ;;  %vm6115_vm15 = vmmov %vm6113_vm7  ;;  %3748 = vrot.lane.b32.xlu0 %v3747_v51, %s3886_s8  ;;  %v3445_v16 = vunpack.i.l.bf16 %v5368_v27  ;;  %vm6120_vm6 = vcmask 97280  }
 0x10a   : > { %v2204_v41 = vsel %vm6111_vm9, %v6110_v18, %v3411_v42  ;;  %v2203_v59 = vsel %vm6115_vm15, %v6114_v47, %v3410_v26  ;;  %vm6117_vm3 = vmmov %vm6116_vm5  ;;  %3753 = vrot.lane.b32.xlu1 %v3752_v46, %s3886_s8  ;;  %v3446_v42 = vunpack.i.h.bf16 %v5368_v27  ;;  %v3456_v26 = vunpack.i.h.bf16 %v3454_v48  ;;  %s3818_s8 = scalar_lea.vmem %s5804_s14, 16 }
 0x10b   : > { %v2237_v6 = vsel %vm6116_vm5, %v2204_v41, %v3430_v2  ;;  %v2238_v45 = vsel %vm6117_vm3, %v2205_v44, %v3431_v34  ;;  %vm6118_vm4 = vmmov %vm6117_vm3  ;;  %v3455_v2 = vunpack.i.l.bf16 %v3454_v48  ;;  %v3474_v34 = vpop.permute.xlu0 %3473  ;;  %v3466_v1 = vunpack.i.h.bf16 %v3464_v19  ;;  %p3819_p11 = scmp.ne.s32.totalorder %s5804_s14, %s3818_s8 }
 0x10c   : > { %v2236_v56 = vsel %vm6118_vm4, %v2203_v59, %v3426_v60  ;;  %vm6119_vm10 = vmmov %vm6117_vm3  ;;  %v2270_v36 = vsel %vm6120_vm6, %v2237_v6, %v3440_v5  ;;  %v3479_v0 = vpop.permute.xlu1 %3478  ;;  %v3465_v60 = vunpack.i.l.bf16 %v3464_v19  ;;  %v3450_v29 = vunpack.i.l.bf16 %v5366_v32 }
 0x10d   : > { %v2235_v43 = vsel %vm6119_vm10, %v2202_v62, %v3425_v13  ;;  %vm6121_vm9 = vmmov %vm6120_vm6  ;;  %v3451_v13 = vunpack.i.h.bf16 %v5366_v32  ;;  %v3476_v62 = vunpack.i.h.bf16 %v3474_v34  ;;  %v3475_v27 = vunpack.i.l.bf16 %v3474_v34  ;;  %3758 = vrot.lane.b32.xlu0 %v5298_v23, %s3883_s20  ;;  %p3820_p12 = pnand %p3819_p11, %p3971_p5 }
 0x10e   : > { %v2271_v14 = vsel %vm6121_vm9, %v2238_v45, %v3441_v17  ;;  %vm6122_vm7 = vmmov %vm6120_vm6  ;;  %3763 = vrot.lane.b32.xlu1 %v5387_v40, %s3883_s20  ;;  %vm6124_vm5 = vcmask 130048   ;;  %v3461_v5 = vunpack.i.h.bf16 %v5392_v11  ;;  %v3460_v19 = vunpack.i.l.bf16 %v5392_v11 }
 0x10f   : > { %v2268_v46 = vsel %vm6122_vm7, %v2235_v43, %v3435_v15  ;;  %vm6123_vm15 = vmmov %vm6120_vm6  ;;  %vm6126_vm4 = vcmask 162816   ;;  %v3471_v52 = vunpack.i.h.bf16 %v5427_v10  ;;  %v3470_v18 = vunpack.i.l.bf16 %v5427_v10  ;;  %v3484_v57 = vpop.permute.xlu0 %3483  ;;  %p3821_p13 = pneg %p3820_p12 }
 0x110   : > { %v2269_v51 = vsel %vm6123_vm15, %v2236_v56, %v3436_v12  ;;  %v2301_v48 = vsel %vm6124_vm5, %v2268_v46, %v3445_v16  ;;  %vm6125_vm3 = vmmov %vm6124_vm5  ;;  %v5468_v41 = vpop.permute.xlu1 %3488  ;;  %vm6128_vm6 = vcmask 195584   ;;  %v3486_v12 = vunpack.i.h.bf16 %v3484_v57 }
 0x111   : > { %v2302_v17 = vsel %vm6125_vm3, %v2269_v51, %v3446_v42  ;;  %v2334_v61 = vsel %vm6126_vm4, %v2301_v48, %v3455_v2  ;;  %vm6127_vm10 = vmmov %vm6126_vm4  ;;  %v3485_v15 = vunpack.i.l.bf16 %v3484_v57  ;;  %v3481_v47 = vunpack.i.h.bf16 %v3479_v0  ;;  %3768 = vrot.lane.b32.xlu0 %v3767_v24, %s3887_s15 }
 0x112   : > { %v2335_v32 = vsel %vm6127_vm10, %v2302_v17, %v3456_v26  ;;  %v2367_v23 = vsel %vm6128_vm6, %v2334_v61, %v3465_v60  ;;  %vm6129_vm9 = vmmov %vm6128_vm6  ;;  %v3480_v59 = vunpack.i.l.bf16 %v3479_v0  ;;  %vm6130_vm7 = vcmask 228352   ;;  %3773 = vrot.lane.b32.xlu1 %v3772_v3, %s3887_s15  ;;  %s3822_s15 = sshll.u32 %s3892_s28, 4  ;;  %s3823_s15 = int_to_ptr.vmem [resolvable:$false] %s3822_s15 }
 0x113   : > { %v2368_v44 = vsel %vm6129_vm9, %v2335_v32, %v3466_v1  ;;  %v2400_v11 = vsel %vm6130_vm7, %v2367_v23, %v3475_v27  ;;  %vm6131_vm15 = vmmov %vm6130_vm7  ;;  %v2304_v45 = vsel %vm6125_vm3, %v2271_v14, %v3451_v13  ;;  %vm6133_vm4 = vcmask 261120   ;;  %v3494_v0 = vpop.permute.xlu0 %3493  ;;  %p3825_p0 = scmp.lt.s32.totalorder %s5804_s14, %s3823_s15 }
 0x114   : > { %v2401_v6 = vsel %vm6131_vm15, %v2368_v44, %v3476_v62  ;;  %vm6132_vm5 = vmmov %vm6125_vm3  ;;  %v2433_v56 = vsel %vm6133_vm4, %v2400_v11, %v3485_v15  ;;  %vm6135_vm6 = vcmask 162816   ;;  %v5482_v2 = vpop.permute.xlu1 %3498  ;;  %vm6137_vm7 = vcmask 195584  }
 0x115   : > { %v2303_v10 = vsel %vm6132_vm5, %v2270_v36, %v3450_v29  ;;  %vm6134_vm10 = vmmov %vm6133_vm4  ;;  %v3496_v34 = vunpack.i.h.bf16 %v3494_v0  ;;  %v3495_v36 = vunpack.i.l.bf16 %v3494_v0  ;;  %vm6139_vm5 = vcmask 228352   ;;  %3778 = vrot.lane.b32.xlu0 %v5429_v9, %s3888_s16 }
 0x116   : > { %v2434_v43 = vsel %vm6134_vm10, %v2401_v6, %v3486_v12  ;;  %v2336_v42 = vsel %vm6135_vm6, %v2303_v10, %v3460_v19  ;;  %vm6136_vm9 = vmmov %vm6135_vm6  ;;  %3783 = vrot.lane.b32.xlu1 %v5418_v50, %s3888_s16  ;;  %vm6142_vm6 = vcmask 293888   ;;  %v1266_v60 = vsel %vm5340_vm1, %v6100_v30, 0.0  ;;  %v6150_v10 = vld [vmem:[#allocation18_spill] sm:$0xff]  ;;  %s3824_s16 = scalar_lea.vmem %s3823_s15, 32 }
 0x117   : > { %v2337_v16 = vsel %vm6136_vm9, %v2304_v45, %v3461_v5  ;;  %v2459_v26 = vpack.c.bf16 %v2434_v43, %v2433_v56  ;;  %v2369_v3 = vsel %vm6137_vm7, %v2336_v42, %v3470_v18  ;;  %vm6138_vm15 = vmmov %vm6137_vm7  ;;  %v1264_v13 = vsel %vm5344_vm0, %v5375_v49, 0.0  ;;  %v3504_v50 = vpop.permute.xlu0 %3503  ;;  %v6154_v43 = vld [vmem:[#allocation14_spill] sm:$0xff]  ;;  %p3826_p1 = scmp.lt.s32.totalorder %s3824_s16, %s3818_s8 }
 0x118   : > { %v2370_v24 = vsel %vm6138_vm15, %v2337_v16, %v3471_v52  ;;  %v2402_v14 = vsel %vm6139_vm5, %v2369_v3, %v3480_v59  ;;  %vm6140_vm3 = vmmov %vm6139_vm5  ;;  %v3509_v62 = vpop.permute.xlu1 %3508  ;;  %v6143_v27 = vmov 0.0   ;;  %v3797_v9 = vpack.i.bf16 %v1266_v60, %v6100_v30  ;;  %v6147_v59 = vld [vmem:[#allocation17_spill] sm:$0xff] }
 0x119   : > { %v2403_v46 = vsel %vm6140_vm3, %v2370_v24, %v3481_v47  ;;  %vm6141_vm10 = vmmov %vm6133_vm4  ;;  %3082 = vmatprep.mubr.msk.bf16.mxu0 %vm6142_vm6, %v2459_v26  ;;  %3788 = vrot.lane.b32.xlu0 %v5387_v40, %s3889_s17  ;;  %v3792_v48 = vpack.i.bf16 %v1264_v13, %v5397_v33  ;;  %v3491_v40 = vunpack.i.h.bf16 %v5468_v41  ;;  %v3500_v30 = vunpack.i.l.bf16 %v5482_v2  ;;  %v6145_v47 = vld [vmem:[#allocation19_spill] sm:$0xff]  ;;  %v6157_v26 = vld [vmem:[#allocation16_spill] sm:$0xff]  ;;  %p3827_p2 = por %p3826_p1, %p3825_p0 }
 0x11a   : > { %v2436_v51 = vsel %vm6133_vm4, %v2403_v46, %v3496_v34  ;;  %v2435_v1 = vsel %vm6141_vm10, %v2402_v14, %v3495_v36  ;;  %2028 = vrot.lane.b32.xlu1 %v6143_v27, %s3889_s17  ;;  %vm6144_vm9 = vmmov %vm6142_vm6  ;;  %v3421_v33 = vunpack.i.h.bf16 %v5284_v63  ;;  %v3490_v61 = vunpack.i.l.bf16 %v5468_v41  ;;  %v6152_v41 = vld [vmem:[#allocation15_spill] sm:$0xff] }
 0x11b   : > { %v2460_v29 = vpack.c.bf16 %v2436_v51, %v2435_v1  ;;  %v3514_v17 = vpop.permute.xlu0 %3513  ;;  %v3511_v32 = vunpack.i.h.bf16 %v3509_v62  ;;  %v3510_v52 = vunpack.i.l.bf16 %v3509_v62  ;;  %v3506_v18 = vunpack.i.h.bf16 %v3504_v50  ;;  %p3828_p3 = pnand %p3827_p2, %p3821_p13 }
 0x11c   : > { %v3519_v54 = vpop.permute.xlu1 %3518  ;;  %v3505_v57 = vunpack.i.l.bf16 %v3504_v50  ;;  %vm6146_vm1 = vnez %v6145_v47  ;;  %vm6149_vm0 = vcmask 31744   ;;  %v3516_v63 = vunpack.i.h.bf16 %v3514_v17 }
 0x11d   : > { %3083 = vmatmul.mubr.msk.bf16.gmra.mrb[12].mxu0 %vm6144_vm9, %v2460_v29  ;;  %3793 = vrot.lane.b32.xlu0 %v3792_v48, %s3890_s18  ;;  %v3521_v23 = vunpack.i.h.bf16 %v3519_v54  ;;  %v3520_v44 = vunpack.i.l.bf16 %v3519_v54  ;;  %v6148_v11 = vsel %vm6146_vm1, %v6147_v59, 0.0  ;;  %vm6151_vm7 = vmmov %vm6149_vm0  ;;  %v3515_v56 = vunpack.i.l.bf16 %v3514_v17 }
 0x11e   : > { %3798 = vrot.lane.b32.xlu1 %v3797_v9, %s3890_s18  ;;  %v2208_v6 = vsel %vm6149_vm0, %v6148_v11, %v3491_v40  ;;  %v2209_v45 = vsel %vm6151_vm7, %v6150_v10, %v3500_v30  ;;  %vm6153_vm15 = vnez %v6152_v41  ;;  %vm6156_vm5 = vmmov %vm6149_vm0  ;;  %vm6159_vm4 = vcmask 64512  }
 0x11f   : > { %v3524_v49 = vpop.permute.xlu0 %3523  ;;  %v6155_v42 = vsel %vm6153_vm15, %v6154_v43, 0.0  ;;  %vm6158_vm3 = vmmov %vm6149_vm0  ;;  %v2241_v3 = vsel %vm6159_vm4, %v2208_v6, %v3510_v52  ;;  %vm6163_vm1 = vcmask 97280  }
 0x120   : > { %v5510_v38 = vpop.permute.xlu1 %3528  ;;  %v2206_v16 = vsel %vm6156_vm5, %v6155_v42, %v3421_v33  ;;  %v2207_v0 = vsel %vm6158_vm3, %v6157_v26, %v3490_v61  ;;  %vm6160_vm10 = vmmov %vm6159_vm4  ;;  %v3526_v14 = vunpack.i.h.bf16 %v3524_v49  ;;  %v3525_v46 = vunpack.i.l.bf16 %v3524_v49 }
 0x121   : > { %v2242_v24 = vsel %vm6160_vm10, %v2209_v45, %v3511_v32  ;;  %vm6161_vm6 = vmmov %vm6159_vm4  ;;  %v2274_v51 = vsel %vm6163_vm1, %v2241_v3, %v3520_v44  ;;  %v3531_v17 = vunpack.i.h.bf16 %v5510_v38  ;;  %v3530_v40 = vunpack.i.l.bf16 %v5510_v38 }
 0x122   : > { %v2240_v34 = vsel %vm6161_vm6, %v2207_v0, %v3506_v18  ;;  %vm6162_vm9 = vmmov %vm6159_vm4  ;;  %vm6167_vm5 = vcmask 130048   ;;  %vm6169_vm4 = vcmask 162816   ;;  %vm6171_vm6 = vcmask 195584  }
 0x123   : > { %v3534_v19 = vpop.permute.xlu0 %3533  ;;  %v2239_v36 = vsel %vm6162_vm9, %v2206_v16, %v3505_v57  ;;  %vm6164_vm0 = vmmov %vm6163_vm1  ;;  %vm6173_vm1 = vcmask 228352  }
 0x124   : > { %v5512_v5 = vpop.permute.xlu1 %3538  ;;  %v2275_v1 = vsel %vm6164_vm0, %v2242_v24, %v3521_v23  ;;  %v3536_v60 = vunpack.i.h.bf16 %v3534_v19  ;;  %v3535_v13 = vunpack.i.l.bf16 %v3534_v19  ;;  %vm6165_vm7 = vmmov %vm6164_vm0 }
 0x125   : > { %v2272_v50 = vsel %vm6165_vm7, %v2239_v36, %v3515_v56  ;;  %vm6166_vm15 = vmmov %vm6164_vm0  ;;  %v3541_v19 = vunpack.i.h.bf16 %v5512_v5  ;;  %v3540_v32 = vunpack.i.l.bf16 %v5512_v5 }
 0x126   : > { %v2273_v9 = vsel %vm6166_vm15, %v2240_v34, %v3516_v63  ;;  %v2305_v33 = vsel %vm6167_vm5, %v2272_v50, %v3525_v46  ;;  %vm6168_vm3 = vmmov %vm6167_vm5  ;;  %vm6177_vm5 = vcmask 261120  }
 0x127   : > { %v3544_v15 = vpop.permute.xlu0 %3543  ;;  %v2306_v61 = vsel %vm6168_vm3, %v2273_v9, %v3526_v14  ;;  %v2338_v52 = vsel %vm6169_vm4, %v2305_v33, %v3535_v13  ;;  %vm6170_vm10 = vmmov %vm6169_vm4  ;;  %v3501_v33 = vunpack.i.h.bf16 %v5482_v2 }
 0x128   : > { %v3549_v12 = vpop.permute.xlu1 %3548  ;;  %v3546_v48 = vunpack.i.h.bf16 %v3544_v15  ;;  %v3545_v54 = vunpack.i.l.bf16 %v3544_v15  ;;  %v2339_v18 = vsel %vm6170_vm10, %v2306_v61, %v3536_v60  ;;  %vm6172_vm9 = vmmov %vm6171_vm6 }
 0x129   : > { %v3551_v57 = vunpack.i.h.bf16 %v3549_v12  ;;  %v3550_v23 = vunpack.i.l.bf16 %v3549_v12  ;;  %vm6174_vm0 = vmmov %vm6173_vm1 }
 0x12a   : > { %v2371_v38 = vsel %vm6171_vm6, %v2338_v52, %v3545_v54  ;;  %v2372_v47 = vsel %vm6172_vm9, %v2339_v18, %v3546_v48  ;;  %vm6175_vm7 = vmmov %vm6168_vm3 }
 0x12b   : > { %v3554_v62 = vpop.permute.xlu0 %3553  ;;  %v2307_v63 = vsel %vm6175_vm7, %v2274_v51, %v3530_v40  ;;  %vm6176_vm15 = vmmov %vm6168_vm3  ;;  %vm6182_vm7 = vcmask 293888   ;;  %v985_v40 = vsel %vm4860_vm14, %v4636_v20, 0.0 }
 0x12c   : > { %v3559_v29 = vpop.permute.xlu1 %3558  ;;  %v3556_v30 = vunpack.i.h.bf16 %v3554_v62  ;;  %v3555_v49 = vunpack.i.l.bf16 %v3554_v62  ;;  %v2308_v56 = vsel %vm6176_vm15, %v2275_v1, %v3531_v17  ;;  %vm6178_vm3 = vmmov %vm6177_vm5  ;;  %v2340_v43 = vsel %vm6169_vm4, %v2307_v63, %v3540_v32 }
 0x12d   : > { %v3561_v6 = vunpack.i.h.bf16 %v3559_v29  ;;  %v3560_v10 = vunpack.i.l.bf16 %v3559_v29  ;;  %vm6179_vm10 = vmmov %vm6169_vm4  ;;  %v2373_v3 = vsel %vm6171_vm6, %v2340_v43, %v3550_v23  ;;  %vm6186_vm4 = vcmask 31744  }
 0x12e   : > { %v2404_v45 = vsel %vm6173_vm1, %v2371_v38, %v3555_v49  ;;  %v2405_v5 = vsel %vm6174_vm0, %v2372_v47, %v3556_v30  ;;  %v2341_v42 = vsel %vm6179_vm10, %v2308_v56, %v3541_v19  ;;  %vm6180_vm9 = vmmov %vm6171_vm6 }
 0x12f   : > { %v3564_v15 = vpop.permute.xlu0 %3563  ;;  %v2374_v24 = vsel %vm6180_vm9, %v2341_v42, %v3551_v57  ;;  %vm6181_vm1 = vmmov %vm6174_vm0  ;;  %vm6193_vm9 = vcmask 64512  }
 0x130   : > { %v3569_v44 = vpop.permute.xlu1 %3568  ;;  %v3566_v59 = vunpack.i.h.bf16 %v3564_v15  ;;  %v3565_v11 = vunpack.i.l.bf16 %v3564_v15  ;;  %v2406_v14 = vsel %vm6181_vm1, %v2373_v3, %v3560_v10  ;;  %v2407_v46 = vsel %vm6174_vm0, %v2374_v24, %v3561_v6  ;;  %vm6183_vm15 = vmmov %vm6178_vm3  ;;  %v6191_v6 = vld [vmem:[#allocation21_spill] sm:$0xff] }
 0x131   : > { %v3571_v30 = vunpack.i.h.bf16 %v3569_v44  ;;  %v3570_v61 = vunpack.i.l.bf16 %v3569_v44  ;;  %vm6187_vm10 = vmmov %vm6186_vm4 }
 0x132   : > { %v2437_v12 = vsel %vm6177_vm5, %v2404_v45, %v3565_v11  ;;  %v2438_v41 = vsel %vm6178_vm3, %v2405_v5, %v3566_v59  ;;  %vm6184_vm5 = vmmov %vm6178_vm3  ;;  %v6188_v11 = vld [vmem:[#allocation20_spill] sm:$0xff] }
 0x133   : > { %v2461_v16 = vpack.c.bf16 %v2438_v41, %v2437_v12  ;;  %v3574_v0 = vpop.permute.xlu0 %3573  ;;  %vm6185_vm3 = vmmov %vm6182_vm7  ;;  %v2212_v47 = vsel %vm6186_vm4, %v985_v40, %v3571_v30  ;;  %v6189_v2 = vsel %vm4552_vm13, %v6188_v11, 0.0 }
 0x134   : > { %v5558_v26 = vpop.permute.xlu1 %3578  ;;  %v3576_v34 = vunpack.i.h.bf16 %v3574_v0  ;;  %v3575_v36 = vunpack.i.l.bf16 %v3574_v0  ;;  %vm6190_vm14 = vmmov %vm6186_vm4 }
 0x135   : > { %3086 = vmatprep.mubr.msk.bf16.mxu0 %vm6182_vm7, %v2461_v16  ;;  %v3580_v49 = vunpack.i.l.bf16 %v5558_v26  ;;  %v2210_v44 = vsel %vm6190_vm14, %v6189_v2, %v3501_v33  ;;  %vm6192_vm6 = vmmov %vm6186_vm4  ;;  %vm6201_vm4 = vcmask 130048   ;;  %vm6203_vm14 = vcmask 162816  }
 0x136   : > { %v2440_v51 = vsel %vm6183_vm15, %v2407_v46, %v3576_v34  ;;  %v2439_v1 = vsel %vm6184_vm5, %v2406_v14, %v3575_v36  ;;  %v2211_v10 = vsel %vm6192_vm6, %v6191_v6, %v3570_v61  ;;  %vm6194_vm1 = vmmov %vm6193_vm9  ;;  %vm6197_vm15 = vcmask 97280  }
 0x137   : > { %v2462_v60 = vpack.c.bf16 %v2440_v51, %v2439_v1  ;;  %v3584_v29 = vpop.permute.xlu0 %3583  ;;  %v2213_v37 = vsel %vm6187_vm10, %v4673_v39, %v3580_v49  ;;  %vm6195_vm0 = vmmov %vm6194_vm1 }
 0x138   : > { %v3589_v13 = vpop.permute.xlu1 %3588  ;;  %v3586_v52 = vunpack.i.h.bf16 %v3584_v29  ;;  %v3585_v18 = vunpack.i.l.bf16 %v3584_v29  ;;  %vm6196_vm7 = vmmov %vm6195_vm0 }
 0x139   : > { %3087 = vmatmul.mubr.msk.bf16.gmra.mrb[16].mxu0 %vm6185_vm3, %v2462_v60  ;;  %v3591_v19 = vunpack.i.h.bf16 %v3589_v13  ;;  %v3590_v32 = vunpack.i.l.bf16 %v3589_v13  ;;  %vm6198_vm5 = vmmov %vm6197_vm15 }
 0x13a   : > { %v2244_v63 = vsel %vm6195_vm0, %v2211_v10, %v3586_v52  ;;  %v2243_v56 = vsel %vm6196_vm7, %v2210_v44, %v3585_v18  ;;  %vm6199_vm13 = vmmov %vm6198_vm5  ;;  %vm6207_vm0 = vcmask 228352  }
 0x13b   : > { %v3594_v50 = vpop.permute.xlu0 %3593  ;;  %v2245_v45 = vsel %vm6193_vm9, %v2212_v47, %v3590_v32  ;;  %v2246_v5 = vsel %vm6194_vm1, %v2213_v37, %v3591_v19  ;;  %vm6200_vm3 = vmmov %vm6198_vm5  ;;  %vm6205_vm9 = vcmask 195584  }
 0x13c   : > { %v3599_v62 = vpop.permute.xlu1 %3598  ;;  %v3596_v20 = vunpack.i.h.bf16 %v3594_v50  ;;  %v3595_v59 = vunpack.i.l.bf16 %v3594_v50  ;;  %vm6202_vm10 = vmmov %vm6201_vm4 }
 0x13d   : > { %v3601_v57 = vunpack.i.h.bf16 %v3599_v62  ;;  %v3600_v23 = vunpack.i.l.bf16 %v3599_v62  ;;  %vm6204_vm6 = vmmov %vm6203_vm14 }
 0x13e   : > { %v2276_v3 = vsel %vm6199_vm13, %v2243_v56, %v3595_v59  ;;  %v2277_v24 = vsel %vm6200_vm3, %v2244_v63, %v3596_v20  ;;  %vm6206_vm1 = vmmov %vm6205_vm9  ;;  %vm6211_vm13 = vcmask 261120  }
 0x13f   : > { %v3604_v48 = vpop.permute.xlu0 %3603  ;;  %v2278_v41 = vsel %vm6197_vm15, %v2245_v45, %v3600_v23  ;;  %v2279_v35 = vsel %vm6198_vm5, %v2246_v5, %v3601_v57  ;;  %vm6208_vm7 = vmmov %vm6207_vm0 }
 0x140   : > { %v5568_v9 = vpop.permute.xlu1 %3608  ;;  %v3606_v39 = vunpack.i.h.bf16 %v3604_v48  ;;  %v3605_v12 = vunpack.i.l.bf16 %v3604_v48  ;;  %vm6209_vm15 = vmmov %vm6201_vm4 }
 0x141   : > { %v3611_v14 = vunpack.i.h.bf16 %v5568_v9  ;;  %v3610_v46 = vunpack.i.l.bf16 %v5568_v9  ;;  %vm6210_vm5 = vmmov %vm6201_vm4 }
 0x142   : > { %v2309_v60 = vsel %vm6201_vm4, %v2276_v3, %v3605_v12  ;;  %v2310_v13 = vsel %vm6202_vm10, %v2277_v24, %v3606_v39  ;;  %vm6212_vm3 = vmmov %vm6211_vm13  ;;  %v989_v24 = vsel %vm5113_vm8, %v4891_v55, 0.0 }
 0x143   : > { %v3614_v17 = vpop.permute.xlu0 %3613  ;;  %v2311_v57 = vsel %vm6209_vm15, %v2278_v41, %v3610_v46  ;;  %v2312_v23 = vsel %vm6210_vm5, %v2279_v35, %v3611_v14  ;;  %vm6213_vm4 = vmmov %vm6204_vm6  ;;  %v3581_v14 = vunpack.i.h.bf16 %v5558_v26 }
 0x144   : > { %v5570_v54 = vpop.permute.xlu1 %3618  ;;  %v3616_v43 = vunpack.i.h.bf16 %v3614_v17  ;;  %v3615_v42 = vunpack.i.l.bf16 %v3614_v17  ;;  %vm6214_vm10 = vmmov %vm6213_vm4 }
 0x145   : > { %v3621_v29 = vunpack.i.h.bf16 %v5570_v54  ;;  %v3620_v62 = vunpack.i.l.bf16 %v5570_v54  ;;  %vm6221_vm15 = vmmov %vm6212_vm3 }
 0x146   : > { %v2342_v50 = vsel %vm6203_vm14, %v2309_v60, %v3615_v42  ;;  %v2343_v48 = vsel %vm6204_vm6, %v2310_v13, %v3616_v43  ;;  %vm6215_vm14 = vmmov %vm6206_vm1  ;;  %v987_v60 = vsel %vm5129_vm12, %v4867_v22, 0.0 }
 0x147   : > { %v3624_v38 = vpop.permute.xlu0 %3623  ;;  %v2344_v47 = vsel %vm6213_vm4, %v2311_v57, %v3620_v62  ;;  %v2345_v37 = vsel %vm6214_vm10, %v2312_v23, %v3621_v29  ;;  %vm6216_vm6 = vmmov %vm6206_vm1  ;;  %vm6227_vm10 = vcmask 64512  }
 0x148   : > { %v3629_v15 = vpop.permute.xlu1 %3628  ;;  %v3626_v34 = vunpack.i.h.bf16 %v3624_v38  ;;  %v3625_v36 = vunpack.i.l.bf16 %v3624_v38  ;;  %vm6228_vm12 = vmmov %vm6227_vm10 }
 0x149   : > { %v3631_v17 = vunpack.i.h.bf16 %v3629_v15  ;;  %v3630_v40 = vunpack.i.l.bf16 %v3629_v15 }
 0x14a   : > { %v2375_v9 = vsel %vm6205_vm9, %v2342_v50, %v3625_v36  ;;  %v2376_v33 = vsel %vm6206_vm1, %v2343_v48, %v3626_v34  ;;  %vm6217_vm9 = vmmov %vm6207_vm0 }
 0x14b   : > { %v3634_v0 = vpop.permute.xlu0 %3633  ;;  %v2377_v2 = vsel %vm6215_vm14, %v2344_v47, %v3630_v40  ;;  %v2378_v44 = vsel %vm6216_vm6, %v2345_v37, %v3631_v17  ;;  %vm6218_vm1 = vmmov %vm6207_vm0 }
 0x14c   : > { %v3639_v16 = vpop.permute.xlu1 %3638  ;;  %v3636_v51 = vunpack.i.h.bf16 %v3634_v0  ;;  %v3635_v1 = vunpack.i.l.bf16 %v3634_v0  ;;  %vm6229_vm14 = vmmov %vm6227_vm10 }
 0x14d   : > { %v3641_v32 = vunpack.i.h.bf16 %v3639_v16  ;;  %v3640_v52 = vunpack.i.l.bf16 %v3639_v16  ;;  %vm6230_vm6 = vmmov %vm6227_vm10 }
 0x14e   : > { %v2408_v18 = vsel %vm6207_vm0, %v2375_v9, %v3635_v1  ;;  %v2409_v54 = vsel %vm6208_vm7, %v2376_v33, %v3636_v51  ;;  %vm6219_vm0 = vcmask 293888   ;;  %vm6220_vm7 = vmmov %vm6212_vm3 }
 0x14f   : > { %v3644_v49 = vpop.permute.xlu0 %3643  ;;  %v2410_v45 = vsel %vm6217_vm9, %v2377_v2, %v3640_v52  ;;  %v2411_v5 = vsel %vm6218_vm1, %v2378_v44, %v3641_v32  ;;  %vm6222_vm5 = vmmov %vm6219_vm0  ;;  %vm6231_vm9 = vcmask 97280  }
 0x150   : > { %v3649_v30 = vpop.permute.xlu1 %3648  ;;  %v3646_v61 = vunpack.i.h.bf16 %v3644_v49  ;;  %v3645_v19 = vunpack.i.l.bf16 %v3644_v49  ;;  %vm6232_vm1 = vmmov %vm6231_vm9 }
 0x151   : > { %v3651_v34 = vunpack.i.h.bf16 %v3649_v30  ;;  %v3650_v46 = vunpack.i.l.bf16 %v3649_v30 }
 0x152   : > { %v2441_v15 = vsel %vm6211_vm13, %v2408_v18, %v3645_v19  ;;  %v2442_v38 = vsel %vm6212_vm3, %v2409_v54, %v3646_v61  ;;  %vm6223_vm13 = vcmask 31744  }
 0x153   : > { %v2463_v20 = vpack.c.bf16 %v2442_v38, %v2441_v15  ;;  %v3654_v11 = vpop.permute.xlu0 %3653  ;;  %v2216_v55 = vsel %vm6223_vm13, %v989_v24, %v3651_v34  ;;  %vm6224_vm8 = vmmov %vm6223_vm13  ;;  %vm6237_vm13 = vcmask 162816  }
 0x154   : > { %v5613_v59 = vpop.permute.xlu1 %3658  ;;  %v3656_v6 = vunpack.i.h.bf16 %v3654_v11  ;;  %v3655_v10 = vunpack.i.l.bf16 %v3654_v11  ;;  %vm6225_vm3 = vmmov %vm6224_vm8 }
 0x155   : > { %3090 = vmatprep.mubr.msk.bf16.mxu0 %vm6219_vm0, %v2463_v20  ;;  %v3660_v36 = vunpack.i.l.bf16 %v5613_v59  ;;  %v2214_v30 = vsel %vm6225_vm3, %v987_v60, %v3581_v14  ;;  %vm6226_vm4 = vmmov %vm6225_vm3  ;;  %vm6239_vm3 = vcmask 195584  }
 0x156   : > { %v2444_v63 = vsel %vm6220_vm7, %v2411_v5, %v3656_v6  ;;  %v2443_v56 = vsel %vm6221_vm15, %v2410_v45, %v3655_v10  ;;  %v2215_v49 = vsel %vm6226_vm4, %v4885_v8, %v3650_v46  ;;  %vm6233_vm0 = vmmov %vm6232_vm1  ;;  %vm6235_vm15 = vcmask 130048  }
 0x157   : > { %v2464_v39 = vpack.c.bf16 %v2444_v63, %v2443_v56  ;;  %v3664_v41 = vpop.permute.xlu0 %3663  ;;  %v2217_v4 = vsel %vm6224_vm8, %v4925_v25, %v3660_v36  ;;  %vm6234_vm7 = vmmov %vm6233_vm0 }
 0x158   : > { %v3669_v12 = vpop.permute.xlu1 %3668  ;;  %v3666_v13 = vunpack.i.h.bf16 %v3664_v41  ;;  %v3665_v29 = vunpack.i.l.bf16 %v3664_v41  ;;  %vm6238_vm8 = vmmov %vm6237_vm13 }
 0x159   : > { %3091 = vmatmul.mubr.msk.bf16.gmra.mrb[20].mxu0 %vm6222_vm5, %v2464_v39  ;;  %v3671_v51 = vunpack.i.h.bf16 %v3669_v12  ;;  %v3670_v1 = vunpack.i.l.bf16 %v3669_v12  ;;  %vm6236_vm5 = vmmov %vm6235_vm15 }
 0x15a   : > { %v2248_v9 = vsel %vm6229_vm14, %v2215_v49, %v3666_v13  ;;  %v2247_v33 = vsel %vm6230_vm6, %v2214_v30, %v3665_v29  ;;  %vm6240_vm4 = vmmov %vm6239_vm3 }
 0x15b   : > { %v3674_v43 = vpop.permute.xlu0 %3673  ;;  %v2249_v22 = vsel %vm6227_vm10, %v2216_v55, %v3670_v1  ;;  %v2250_v7 = vsel %vm6228_vm12, %v2217_v4, %v3671_v51  ;;  %vm6241_vm10 = vcmask 228352   ;;  %vm6243_vm14 = vmmov %vm6236_vm5 }
 0x15c   : > { %v3679_v35 = vpop.permute.xlu1 %3678  ;;  %v3676_v40 = vunpack.i.h.bf16 %v3674_v43  ;;  %v3675_v26 = vunpack.i.l.bf16 %v3674_v43  ;;  %vm6242_vm12 = vmmov %vm6241_vm10 }
 0x15d   : > { %v3681_v62 = vunpack.i.h.bf16 %v3679_v35  ;;  %v3680_v50 = vunpack.i.l.bf16 %v3679_v35  ;;  %vm6244_vm6 = vmmov %vm6236_vm5 }
 0x15e   : > { %v2280_v8 = vsel %vm6233_vm0, %v2247_v33, %v3675_v26  ;;  %v2281_v23 = vsel %vm6234_vm7, %v2248_v9, %v3676_v40  ;;  %vm6247_vm0 = vmmov %vm6238_vm8  ;;  %v3661_v33 = vunpack.i.h.bf16 %v5613_v59 }
 0x15f   : > { %v3684_v16 = vpop.permute.xlu0 %3683  ;;  %v2282_v32 = vsel %vm6231_vm9, %v2249_v22, %v3680_v50  ;;  %v2283_v25 = vsel %vm6232_vm1, %v2250_v7, %v3681_v62  ;;  %vm6245_vm9 = vcmask 261120   ;;  %vm6248_vm7 = vmmov %vm6247_vm0 }
 0x160   : > { %v5623_v42 = vpop.permute.xlu1 %3688  ;;  %v3686_v61 = vunpack.i.h.bf16 %v3684_v16  ;;  %v3685_v19 = vunpack.i.l.bf16 %v3684_v16  ;;  %vm6246_vm1 = vmmov %vm6245_vm9 }
 0x161   : > { %v3691_v47 = vunpack.i.h.bf16 %v5623_v42  ;;  %v3690_v37 = vunpack.i.l.bf16 %v5623_v42 }
 0x162   : > { %v2313_v2 = vsel %vm6235_vm15, %v2280_v8, %v3685_v19  ;;  %v2314_v44 = vsel %vm6236_vm5, %v2281_v23, %v3686_v61  ;;  %vm6249_vm15 = vmmov %vm6239_vm3 }
 0x163   : > { %v3694_v3 = vpop.permute.xlu0 %3693  ;;  %v2315_v34 = vsel %vm6243_vm14, %v2282_v32, %v3690_v37  ;;  %v2316_v36 = vsel %vm6244_vm6, %v2283_v25, %v3691_v47  ;;  %vm6250_vm5 = vmmov %vm6239_vm3  ;;  %v991_v32 = vsel %vm5362_vm11, %v5120_v53, 0.0  ;;  %vm6257_vm14 = vcmask 31744  }
 0x164   : > { %v5625_v0 = vpop.permute.xlu1 %3698  ;;  %v3696_v52 = vunpack.i.h.bf16 %v3694_v3  ;;  %v3695_v18 = vunpack.i.l.bf16 %v3694_v3  ;;  %v2218_v23 = vsel %vm6257_vm14, %v991_v32, %v3661_v33  ;;  %vm6258_vm6 = vmmov %vm6257_vm14 }
 0x165   : > { %v3701_v6 = vunpack.i.h.bf16 %v5625_v0  ;;  %v3700_v10 = vunpack.i.l.bf16 %v5625_v0  ;;  %vm6261_vm11 = vmmov %vm6258_vm6 }
 0x166   : > { %v2346_v45 = vsel %vm6237_vm13, %v2313_v2, %v3695_v18  ;;  %v2347_v5 = vsel %vm6238_vm8, %v2314_v44, %v3696_v52  ;;  %vm6251_vm13 = vmmov %vm6241_vm10  ;;  %v993_v52 = vsel %vm5348_vm2, %v5140_v31, 0.0  ;;  %vm6262_vm2 = vcmask 64512  }
 0x167   : > { %v3704_v17 = vpop.permute.xlu0 %3703  ;;  %v2348_v51 = vsel %vm6247_vm0, %v2315_v34, %v3700_v10  ;;  %v2349_v1 = vsel %vm6248_vm7, %v2316_v36, %v3701_v6  ;;  %vm6252_vm8 = vmmov %vm6241_vm10 }
 0x168   : > { %v3709_v48 = vpop.permute.xlu1 %3708  ;;  %v3706_v15 = vunpack.i.h.bf16 %v3704_v17  ;;  %v3705_v38 = vunpack.i.l.bf16 %v3704_v17 }
 0x169   : > { %v3711_v63 = vunpack.i.h.bf16 %v3709_v48  ;;  %v3710_v56 = vunpack.i.l.bf16 %v3709_v48 }
 0x16a   : > { %v2379_v41 = vsel %vm6239_vm3, %v2346_v45, %v3705_v38  ;;  %v2380_v35 = vsel %vm6240_vm4, %v2347_v5, %v3706_v15  ;;  %vm6253_vm3 = vcmask 293888   ;;  %vm6254_vm4 = vmmov %vm6246_vm1 }
 0x16b   : > { %v3714_v57 = vpop.permute.xlu0 %3713  ;;  %v2381_v62 = vsel %vm6249_vm15, %v2348_v51, %v3710_v56  ;;  %v2382_v50 = vsel %vm6250_vm5, %v2349_v1, %v3711_v63  ;;  %vm6266_vm15 = vcmask 97280  }
 0x16c   : > { %v3719_v54 = vpop.permute.xlu1 %3718  ;;  %v3716_v20 = vunpack.i.h.bf16 %v3714_v57  ;;  %v3715_v11 = vunpack.i.l.bf16 %v3714_v57  ;;  %vm6267_vm5 = vmmov %vm6266_vm15 }
 0x16d   : > { %v3721_v16 = vunpack.i.h.bf16 %v3719_v54  ;;  %v3720_v3 = vunpack.i.l.bf16 %v3719_v54 }
 0x16e   : > { %v2412_v24 = vsel %vm6241_vm10, %v2379_v41, %v3715_v11  ;;  %v2413_v0 = vsel %vm6242_vm12, %v2380_v35, %v3716_v20  ;;  %vm6255_vm10 = vmmov %vm6246_vm1  ;;  %v6260_v20 = vld [vmem:[#allocation22_spill] sm:$0xff] }
 0x16f   : > { %v3724_v12 = vpop.permute.xlu0 %3723  ;;  %v2414_v55 = vsel %vm6251_vm13, %v2381_v62, %v3720_v3  ;;  %v2415_v4 = vsel %vm6252_vm8, %v2382_v50, %v3721_v16  ;;  %vm6256_vm12 = vmmov %vm6253_vm3 }
 0x170   : > { %v3729_v39 = vpop.permute.xlu1 %3728  ;;  %v3726_v43 = vunpack.i.h.bf16 %v3724_v12  ;;  %v3725_v42 = vunpack.i.l.bf16 %v3724_v12  ;;  %vm6268_vm13 = vmmov %vm6267_vm5 }
 0x171   : > { %v3731_v25 = vunpack.i.h.bf16 %v3729_v39  ;;  %v3730_v18 = vunpack.i.l.bf16 %v3729_v39  ;;  %vm6269_vm8 = vmmov %vm6267_vm5 }
 0x172   : > { %v2445_v14 = vsel %vm6245_vm9, %v2412_v24, %v3725_v42  ;;  %v2446_v46 = vsel %vm6246_vm1, %v2413_v0, %v3726_v43  ;;  %vm6259_vm9 = vmmov %vm6258_vm6 }
 0x173   : > { %v2465_v60 = vpack.c.bf16 %v2446_v46, %v2445_v14  ;;  %v3734_v29 = vpop.permute.xlu0 %3733  ;;  %v2220_v47 = vsel %vm6258_vm6, %v993_v52, %v3731_v25  ;;  %v2219_v58 = vsel %vm6261_vm11, %v6260_v20, %v3730_v18  ;;  %vm6263_vm1 = vmmov %vm6262_vm2  ;;  %vm6275_vm6 = vcmask 195584  }
 0x174   : > { %v1328_v13 = vpop.permute.xlu1 %1327  ;;  %v3736_v48 = vunpack.i.h.bf16 %v3734_v29  ;;  %v3735_v17 = vunpack.i.l.bf16 %v3734_v29  ;;  %vm6264_vm0 = vmmov %vm6263_vm1 }
 0x175   : > { %3094 = vmatprep.mubr.msk.bf16.mxu0 %vm6253_vm3, %v2465_v60  ;;  %v2221_v21 = vsel %vm6259_vm9, %v5174_v28, %v1328_v13  ;;  %vm6265_vm7 = vmmov %vm6264_vm0  ;;  %vm6270_vm3 = vcmask 130048  }
 0x176   : > { %v2448_v40 = vsel %vm6254_vm4, %v2415_v4, %v3736_v48  ;;  %v2447_v26 = vsel %vm6255_vm10, %v2414_v55, %v3735_v17  ;;  %vm6271_vm4 = vmmov %vm6270_vm3  ;;  %v5706_v4 = vld [vmem:[%s5847_s3] ss:$0 sm:$0xff] }
 0x177   : > { %v2466_v30 = vpack.c.bf16 %v2448_v40, %v2447_v26  ;;  %v3739_v22 = vpop.permute.xlu0 %3738  ;;  %vm6272_vm10 = vmmov %vm6270_vm3 }
 0x178   : > { %v3744_v49 = vpop.permute.xlu1 %3743  ;;  %v3741_v8 = vunpack.i.h.bf16 %v3739_v22  ;;  %v3740_v15 = vunpack.i.l.bf16 %v3739_v22  ;;  %vm6276_vm9 = vmmov %vm6275_vm6 }
 0x179   : > { %3095 = vmatmul.mubr.msk.bf16.gmra.mrb[24].mxu0 %vm6256_vm12, %v2466_v30  ;;  %v3746_v54 = vunpack.i.h.bf16 %v3744_v49  ;;  %v3745_v57 = vunpack.i.l.bf16 %v3744_v49  ;;  %vm6273_vm12 = vcmask 162816   ;;  %vm6277_vm11 = vmmov %vm6270_vm3 }
 0x17a   : > { %v2252_v6 = vsel %vm6264_vm0, %v2219_v58, %v3741_v8  ;;  %v2251_v5 = vsel %vm6265_vm7, %v2218_v23, %v3740_v15  ;;  %vm6274_vm14 = vmmov %vm6273_vm12 }
 0x17b   : > { %v3749_v9 = vpop.permute.xlu0 %3748  ;;  %v2254_v31 = vsel %vm6262_vm2, %v2221_v21, %v3746_v54  ;;  %v2253_v44 = vsel %vm6263_vm1, %v2220_v47, %v3745_v57  ;;  %vm6278_vm2 = vmmov %vm6273_vm12 }
 0x17c   : > { %v3754_v7 = vpop.permute.xlu1 %3753  ;;  %v3751_v11 = vunpack.i.h.bf16 %v3749_v9  ;;  %v3750_v2 = vunpack.i.l.bf16 %v3749_v9  ;;  %vm6279_vm1 = vmmov %vm6278_vm2 }
 0x17d   : > { %v3756_v53 = vunpack.i.h.bf16 %v3754_v7  ;;  %v3755_v37 = vunpack.i.l.bf16 %v3754_v7  ;;  %vm6280_vm0 = vmmov %vm6275_vm6 }
 0x17e   : > { %v2284_v16 = vsel %vm6268_vm13, %v2251_v5, %v3750_v2  ;;  %v2285_v3 = vsel %vm6269_vm8, %v2252_v6, %v3751_v11  ;;  %vm6281_vm7 = vmmov %vm6280_vm0 }
 0x17f   : > { %v3759_v19 = vpop.permute.xlu0 %3758  ;;  %v2286_v41 = vsel %vm6266_vm15, %v2253_v44, %v3755_v37  ;;  %v2287_v35 = vsel %vm6267_vm5, %v2254_v31, %v3756_v53  ;;  %vm6282_vm15 = vcmask 228352  }
 0x180   : > { %v3764_v61 = vpop.permute.xlu1 %3763  ;;  %v3760_v63 = vunpack.i.l.bf16 %v3759_v19  ;;  %v3761_v24 = vunpack.i.h.bf16 %v3759_v19  ;;  %vm6283_vm5 = vmmov %vm6282_vm15 }
 0x181   : > { %v3766_v10 = vunpack.i.h.bf16 %v3764_v61  ;;  %v3765_v45 = vunpack.i.l.bf16 %v3764_v61  ;;  %vm6284_vm13 = vmmov %vm6283_vm5 }
 0x182   : > { %v2317_v51 = vsel %vm6272_vm10, %v2284_v16, %v3760_v63  ;;  %v2318_v40 = vsel %vm6277_vm11, %v2285_v3, %v3761_v24  ;;  %vm6285_vm8 = vmmov %vm6283_vm5 }
 0x183   : > { %v3769_v59 = vpop.permute.xlu0 %3768  ;;  %v2319_v34 = vsel %vm6270_vm3, %v2286_v41, %v3765_v45  ;;  %v2320_v36 = vsel %vm6271_vm4, %v2287_v35, %v3766_v10  ;;  %vm6286_vm3 = vcmask 261120  }
 0x184   : > { %v3774_v38 = vpop.permute.xlu1 %3773  ;;  %v3770_v0 = vunpack.i.l.bf16 %v3769_v59  ;;  %v3771_v14 = vunpack.i.h.bf16 %v3769_v59  ;;  %vm6287_vm4 = vmmov %vm6286_vm3 }
 0x185   : > { %v3776_v56 = vunpack.i.h.bf16 %v3774_v38  ;;  %v3775_v28 = vunpack.i.l.bf16 %v3774_v38  ;;  %vm6288_vm10 = vmmov %vm6286_vm3 }
 0x186   : > { %v2350_v26 = vsel %vm6278_vm2, %v2317_v51, %v3770_v0  ;;  %v2351_v49 = vsel %vm6279_vm1, %v2318_v40, %v3771_v14  ;;  %vm6293_vm2 = vcmask 1040384  }
 0x187   : > { %v3779_v12 = vpop.permute.xlu0 %3778  ;;  %v2352_v13 = vsel %vm6273_vm12, %v2319_v34, %v3775_v28  ;;  %v2353_v29 = vsel %vm6274_vm14, %v2320_v36, %v3776_v56  ;;  %vm6289_vm12 = vmmov %vm6286_vm3  ;;  %vm6290_vm14 = vcmask 293888  }
 0x188   : > { %v3784_v39 = vpop.permute.xlu1 %3783  ;;  %v3780_v46 = vunpack.i.l.bf16 %v3779_v12  ;;  %v3781_v1 = vunpack.i.h.bf16 %v3779_v12  ;;  %vm6294_vm1 = vmmov %vm6293_vm2 }
 0x189   : > { %v3786_v43 = vunpack.i.h.bf16 %v3784_v39  ;;  %v3785_v42 = vunpack.i.l.bf16 %v3784_v39 }
 0x18a   : > { %v2383_v22 = vsel %vm6280_vm0, %v2350_v26, %v3780_v46  ;;  %v2384_v9 = vsel %vm6281_vm7, %v2351_v49, %v3781_v1  ;;  %v3805_v49 = vld [vmem:[%s5848_s4] sm:$0xff]  }
 0x18b   : > { %v3789_v62 = vpop.permute.xlu0 %3788  ;;  %v2385_v50 = vsel %vm6275_vm6, %v2352_v13, %v3785_v42  ;;  %v2386_v48 = vsel %vm6276_vm9, %v2353_v29, %v3786_v43  ;;  %vm6291_vm6 = vmmov %vm6290_vm14  ;;  %3103 = vmatpush3.bf16.msra.mxu1 %v3805_v49  ;;  %vm3891_vm9 = vmmov 0  }
 0x18c   : > { %v2029_v60 = vpop.permute.xlu1 %2028  ;;  %v3791_v17 = vunpack.i.h.bf16 %v3789_v62  ;;  %v3790_v55 = vunpack.i.l.bf16 %v3789_v62  ;;  %v3072_v30 = vpop.f32.mrb[0].mxu0  ;;  %3104 = vmatprep.subr.bf16.mxu1 %v6143_v27  ;;  %3118 = vmatprep.mubr.msk.bf16.mxu1 %vm3891_vm9, %v6143_v27 }
 0x18d   : > { %v2583_v7 = vpop.f32.mrb[1].mxu0  ;;  %v2418_v33 = vsel %vm6282_vm15, %v2385_v50, %v2029_v60  ;;  %v2419_v61 = vsel %vm6283_vm5, %v2386_v48, %v2029_v60  ;;  %v2592_v15 = vadd.f32 %v3072_v30, %v5706_v4 }
 0x18e   : > { %v2584_v19 = vadd.f32 %v5706_v4, %v2583_v7  ;;  %v3073_v32 = vpop.f32.mrb[2].mxu0  ;;  %v2416_v52 = vsel %vm6284_vm13, %v2383_v22, %v3790_v55  ;;  %v2417_v18 = vsel %vm6285_vm8, %v2384_v9, %v3791_v17 }
 0x18f   : > { %v3794_v8 = vpop.permute.xlu0 %3793  ;;  %v2586_v23 = vpop.f32.mrb[3].mxu0  ;;  %v2595_v53 = vadd.f32 %v3073_v32, %v5706_v4  ;;  %v2712_v6 = vmax.f32 %v2592_v15, 0.0 }
 0x190   : > { %v3799_v25 = vpop.permute.xlu1 %3798  ;;  %v3796_v38 = vunpack.i.h.bf16 %v3794_v8  ;;  %v3795_v59 = vunpack.i.l.bf16 %v3794_v8  ;;  %v2587_v47 = vadd.f32 %v5706_v4, %v2586_v23  ;;  %v2710_v21 = vmax.f32 %v2584_v19, 0.0 }
 0x191   : > { %v3801_v54 = vunpack.i.h.bf16 %v3799_v25  ;;  %v3800_v57 = vunpack.i.l.bf16 %v3799_v25  ;;  %v2713_v45 = vmax.f32 %v2595_v53, 0.0 }
 0x192   : > { %v2449_v31 = vsel %vm6288_vm10, %v2416_v52, %v3795_v59  ;;  %v2450_v11 = vsel %vm6289_vm12, %v2417_v18, %v3796_v38  ;;  %v2711_v2 = vmax.f32 %v2587_v47, 0.0  ;;  %v3807_v52 = vld [vmem:[%s5848_s4 + $0x10] sm:$0xff]   ;;  %v3808_v59 = vld [vmem:[%s5848_s4 + $0x18] sm:$0xff]  }
 0x193   : > { %v2451_v37 = vsel %vm6286_vm3, %v2418_v33, %v3800_v57  ;;  %v2452_v20 = vsel %vm6287_vm4, %v2419_v61, %v3801_v54  ;;  %v2467_v44 = vpack.c.bf16 %v2450_v11, %v2449_v31  ;;  %v3806_v33 = vld [vmem:[%s5848_s4 + $0x8] sm:$0xff]   ;;  %v3811_v11 = vld [vmem:[%s5848_s4 + $0x30] sm:$0xff]  }
 0x194   : > { %v2468_v58 = vpack.c.bf16 %v2452_v20, %v2451_v37  ;;  %v2742_v10 = vadd.f32 %v2711_v2, %v2710_v21  ;;  %3105 = vmatpush3.bf16.msra.mxu1 %v3806_v33  ;;  %v3809_v20 = vld [vmem:[%s5848_s4 + $0x20] sm:$0xff]   ;;  %v3810_v31 = vld [vmem:[%s5848_s4 + $0x28] sm:$0xff]   ;;  %v3812_v2 = vld [vmem:[%s5848_s4 + $0x38] sm:$0xff]  }
 0x195   : > { %3098 = vmatprep.mubr.msk.bf16.mxu0 %vm6290_vm14, %v2467_v44  ;;  %3106 = vmatprep.subr.bf16.mxu1 %v6143_v27 }
 0x196   : > { %v2743_v5 = vadd.f32 %v2742_v10, %v2712_v6  ;;  %3099 = vmatmul.mubr.msk.bf16.gmra.mrb[28].mxu0 %vm6291_vm6, %v2468_v58 }
 0x198   : > { %v2744_v63 = vadd.f32 %v2743_v5, %v2713_v45  ;;  %3107 = vmatpush3.bf16.msra.mxu1 %v3807_v52 }
 0x199   : > { %3108 = vmatprep.subr.bf16.mxu1 %v6143_v27 }
 0x19c   : > { %3109 = vmatpush3.bf16.msra.mxu1 %v3808_v59 }
 0x19d   : > { %3110 = vmatprep.subr.bf16.mxu1 %v6143_v27 }
 0x1a0   : > { %3111 = vmatpush3.bf16.msra.mxu1 %v3809_v20 }
 0x1a1   : > { %3112 = vmatprep.subr.bf16.mxu1 %v6143_v27 }
 0x1a4   : > { %3113 = vmatpush3.bf16.msra.mxu1 %v3810_v31 }
 0x1a5   : > { %3114 = vmatprep.subr.bf16.mxu1 %v6143_v27 }
 0x1a8   : > { %3115 = vmatpush3.bf16.msra.mxu1 %v3811_v11 }
 0x1a9   : > { %3116 = vmatprep.subr.bf16.mxu1 %v6143_v27 }
 0x1ac   : > { %3117 = vmatpush3.bf16.msra.mxu1 %v3812_v2 }
 0x1ae   : > { %v3076_v56 = vpop.f32.mrb[4].mxu0 }
 0x1af   : > { %v2599_v28 = vpop.f32.mrb[5].mxu0  ;;  %v2608_v35 = vadd.f32 %v3076_v56, %v5706_v4 }
 0x1b0   : > { %v2600_v39 = vadd.f32 %v5706_v4, %v2599_v28  ;;  %v3077_v12 = vpop.f32.mrb[6].mxu0 }
 0x1b1   : > { %v2602_v41 = vpop.f32.mrb[7].mxu0  ;;  %v2611_v3 = vadd.f32 %v3077_v12, %v5706_v4  ;;  %v2716_v0 = vmax.f32 %v2608_v35, 0.0 }
 0x1b2   : > { %v2714_v43 = vmax.f32 %v2600_v39, 0.0  ;;  %v2603_v42 = vadd.f32 %v5706_v4, %v2602_v41 }
 0x1b3   : > { %v2717_v36 = vmax.f32 %v2611_v3, 0.0 }
 0x1b4   : > { %v2745_v16 = vadd.f32 %v2744_v63, %v2714_v43  ;;  %v2715_v24 = vmax.f32 %v2603_v42, 0.0 }
 0x1b6   : > { %v2746_v34 = vadd.f32 %v2745_v16, %v2715_v24 }
 0x1b8   : > { %v2747_v14 = vadd.f32 %v2746_v34, %v2716_v0 }
 0x1ba   : > { %v2748_v46 = vadd.f32 %v2747_v14, %v2717_v36 }
 0x1d2   : > { %v3080_v51 = vpop.f32.mrb[8].mxu0 }
 0x1d3   : > { %v2615_v1 = vpop.f32.mrb[9].mxu0  ;;  %v2624_v62 = vadd.f32 %v3080_v51, %v5706_v4 }
 0x1d4   : > { %v2616_v60 = vadd.f32 %v5706_v4, %v2615_v1  ;;  %v3081_v13 = vpop.f32.mrb[10].mxu0 }
 0x1d5   : > { %v2618_v29 = vpop.f32.mrb[11].mxu0  ;;  %v2627_v55 = vadd.f32 %v3081_v13, %v5706_v4  ;;  %v2720_v26 = vmax.f32 %v2624_v62, 0.0 }
 0x1d6   : > { %v2718_v50 = vmax.f32 %v2616_v60, 0.0  ;;  %v2619_v48 = vadd.f32 %v5706_v4, %v2618_v29 }
 0x1d7   : > { %v2721_v22 = vmax.f32 %v2627_v55, 0.0 }
 0x1d8   : > { %v2749_v17 = vadd.f32 %v2748_v46, %v2718_v50  ;;  %v2719_v40 = vmax.f32 %v2619_v48, 0.0 }
 0x1da   : > { %v2750_v30 = vadd.f32 %v2749_v17, %v2719_v40 }
 0x1dc   : > { %v2751_v7 = vadd.f32 %v2750_v30, %v2720_v26 }
 0x1de   : > { %v2752_v9 = vadd.f32 %v2751_v7, %v2721_v22 }
 0x1f0   : > { %v3084_v61 = vpop.f32.mrb[12].mxu0 }
 0x1f1   : > { %v2631_v19 = vpop.f32.mrb[13].mxu0  ;;  %v2640_v54 = vadd.f32 %v3084_v61, %v5706_v4 }
 0x1f2   : > { %v2632_v32 = vadd.f32 %v5706_v4, %v2631_v19  ;;  %v3085_v25 = vpop.f32.mrb[14].mxu0 }
 0x1f3   : > { %v2634_v18 = vpop.f32.mrb[15].mxu0  ;;  %v2643_v15 = vadd.f32 %v3085_v25, %v5706_v4  ;;  %v2724_v47 = vmax.f32 %v2640_v54, 0.0 }
 0x1f4   : > { %v2722_v57 = vmax.f32 %v2632_v32, 0.0  ;;  %v2635_v8 = vadd.f32 %v5706_v4, %v2634_v18 }
 0x1f5   : > { %v2725_v53 = vmax.f32 %v2643_v15, 0.0 }
 0x1f6   : > { %v2753_v23 = vadd.f32 %v2752_v9, %v2722_v57  ;;  %v2723_v38 = vmax.f32 %v2635_v8, 0.0 }
 0x1f8   : > { %v2754_v21 = vadd.f32 %v2753_v23, %v2723_v38 }
 0x1fa   : > { %v2755_v37 = vadd.f32 %v2754_v21, %v2724_v47 }
 0x1fc   : > { %v2756_v58 = vadd.f32 %v2755_v37, %v2725_v53 }
 0x20c   : > { %v3088_v44 = vpop.f32.mrb[16].mxu0 }
 0x20d   : > { %v2647_v6 = vpop.f32.mrb[17].mxu0  ;;  %v2656_v63 = vadd.f32 %v3088_v44, %v5706_v4 }
 0x20e   : > { %v2648_v10 = vadd.f32 %v5706_v4, %v2647_v6  ;;  %v3089_v45 = vpop.f32.mrb[18].mxu0 }
 0x20f   : > { %v2650_v5 = vpop.f32.mrb[19].mxu0  ;;  %v2659_v12 = vadd.f32 %v3089_v45, %v5706_v4  ;;  %v2728_v35 = vmax.f32 %v2656_v63, 0.0 }
 0x210   : > { %v2726_v56 = vmax.f32 %v2648_v10, 0.0  ;;  %v2651_v28 = vadd.f32 %v5706_v4, %v2650_v5 }
 0x211   : > { %v2729_v42 = vmax.f32 %v2659_v12, 0.0  ;;  %v6292_v12 = vlaneseq }
 0x212   : > { %v2757_v39 = vadd.f32 %v2756_v58, %v2726_v56  ;;  %v2727_v41 = vmax.f32 %v2651_v28, 0.0 }
 0x214   : > { %v2758_v43 = vadd.f32 %v2757_v39, %v2727_v41  ;;  %v2887_v41 = vand.u32 127, %v6292_v12 }
 0x216   : > { %v2759_v27 = vadd.f32 %v2758_v43, %v2728_v35  ;;  %vm2888_vm11 = vcmp.lt.s32.totalorder %v2887_v41, 10 }
 0x218   : > { %v2760_v16 = vadd.f32 %v2759_v27, %v2729_v42 }
 0x22c   : > { %v3092_v3 = vpop.f32.mrb[20].mxu0 }
 0x22d   : > { %v2663_v24 = vpop.f32.mrb[21].mxu0  ;;  %v2672_v14 = vadd.f32 %v3092_v3, %v5706_v4 }
 0x22e   : > { %v2664_v0 = vadd.f32 %v5706_v4, %v2663_v24  ;;  %v3093_v34 = vpop.f32.mrb[22].mxu0 }
 0x22f   : > { %v2666_v36 = vpop.f32.mrb[23].mxu0  ;;  %v2675_v60 = vadd.f32 %v3093_v34, %v5706_v4  ;;  %v2732_v29 = vmax.f32 %v2672_v14, 0.0 }
 0x230   : > { %v2730_v46 = vmax.f32 %v2664_v0, 0.0  ;;  %v2667_v51 = vadd.f32 %v5706_v4, %v2666_v36 }
 0x231   : > { %v2733_v50 = vmax.f32 %v2675_v60, 0.0 }
 0x232   : > { %v2761_v1 = vadd.f32 %v2760_v16, %v2730_v46  ;;  %v2731_v13 = vmax.f32 %v2667_v51, 0.0 }
 0x234   : > { %v2762_v62 = vadd.f32 %v2761_v1, %v2731_v13 }
 0x236   : > { %v2763_v48 = vadd.f32 %v2762_v62, %v2732_v29 }
 0x238   : > { %v2764_v17 = vadd.f32 %v2763_v48, %v2733_v50 }
 0x24c   : > { %v3096_v55 = vpop.f32.mrb[24].mxu0 }
 0x24d   : > { %v2679_v40 = vpop.f32.mrb[25].mxu0  ;;  %v2688_v22 = vadd.f32 %v3096_v55, %v5706_v4 }
 0x24e   : > { %v2680_v26 = vadd.f32 %v5706_v4, %v2679_v40  ;;  %v3097_v30 = vpop.f32.mrb[26].mxu0 }
 0x24f   : > { %v2682_v49 = vpop.f32.mrb[27].mxu0  ;;  %v2691_v61 = vadd.f32 %v3097_v30, %v5706_v4  ;;  %v2736_v32 = vmax.f32 %v2688_v22, 0.0 }
 0x250   : > { %v2734_v7 = vmax.f32 %v2680_v26, 0.0  ;;  %v2683_v9 = vadd.f32 %v5706_v4, %v2682_v49 }
 0x251   : > { %v2737_v52 = vmax.f32 %v2691_v61, 0.0 }
 0x252   : > { %v2765_v33 = vadd.f32 %v2764_v17, %v2734_v7  ;;  %v2735_v19 = vmax.f32 %v2683_v9, 0.0 }
 0x254   : > { %v2766_v25 = vadd.f32 %v2765_v33, %v2735_v19 }
 0x256   : > { %v2767_v18 = vadd.f32 %v2766_v25, %v2736_v32 }
 0x258   : > { %v2768_v54 = vadd.f32 %v2767_v18, %v2737_v52 }
 0x269   : > { %v3100_v57 = vpop.f32.mrb[28].mxu0 }
 0x26a   : > { %v2695_v8 = vpop.f32.mrb[29].mxu0  ;;  %v2704_v59 = vadd.f32 %v3100_v57, %v5706_v4 }
 0x26b   : > { %v2696_v23 = vadd.f32 %v5706_v4, %v2695_v8  ;;  %v3101_v15 = vpop.f32.mrb[30].mxu0 }
 0x26c   : > { %v2698_v38 = vpop.f32.mrb[31].mxu0  ;;  %v2707_v37 = vadd.f32 %v3101_v15, %v5706_v4  ;;  %v2740_v58 = vmax.f32 %v2704_v59, 0.0 }
 0x26d   : > { %v2738_v47 = vmax.f32 %v2696_v23, 0.0  ;;  %v2699_v21 = vadd.f32 %v5706_v4, %v2698_v38  ;;  %v2797_v4 = vld [vmem:[%s5849_s5] sm:$0x1] }
 0x26e   : > { %v2741_v11 = vmax.f32 %v2707_v37, 0.0 }
 0x26f   : > { %v2769_v53 = vadd.f32 %v2768_v54, %v2738_v47  ;;  %v2739_v20 = vmax.f32 %v2699_v21, 0.0 }
 0x271   : > { %v2770_v31 = vadd.f32 %v2769_v53, %v2739_v20 }
 0x273   : > { %v2771_v2 = vadd.f32 %v2770_v31, %v2740_v58 }
 0x275   : > { %v2772_v44 = vadd.f32 %v2771_v2, %v2741_v11 }
 0x277   : > { %v2773_v6 = vrot.slane %v2772_v44, 4 }
 0x279   : > { %v2774_v10 = vadd.f32 %v2773_v6, %v2772_v44 }
 0x27b   : > { %v2775_v45 = vrot.slane %v2774_v10, 2 }
 0x27d   : > { %v2776_v5 = vadd.f32 %v2775_v45, %v2774_v10 }
 0x27f   : > { %v2777_v63 = vrot.slane %v2776_v5, 1 }
 0x281   : > { %v2778_v56 = vadd.f32 %v2777_v63, %v2776_v5 }
 0x283   : > { %v2779_v28 = vmul.f32 0.00390625, %v2778_v56 }
 0x285   : > { %v2780_v39 = vpack.c.bf16 %v2779_v28, %v2779_v28 }
 0x287   : > { %3119 = vmatmul.mubr.bf16.vlgmr.msra.gmra.mrb[0].mxu1 %v2780_v39 }
 0x35a   : > { %v2880_v35 = vpop.f32.mrb[0].mxu1 }
 0x35b   : > { %v2881_v43 = vadd.f32 %v2880_v35, %v2797_v4  ;;  %v3120_v42 = vpop.f32.mrb[1].mxu1 }
 0x35c   : > { %v2883_v27 = vpop.f32.mrb[2].mxu1 }
 0x35d   : > { %2902 = vst [vmem:[%s284_s23] sm:$0x1] %v2881_v43  ;;  %v3121_v16 = vpop.f32.mrb[3].mxu1  ;;  %v2889_v3 = vsel %vm2888_vm11, %v2881_v43, -inf }
 0x35e   : > { %v2890_v24 = vsel %vm6293_vm2, %v2889_v3, -inf }
 0x35f   : > { %2891 = vmax.xlane.f32.xlu0 %v2890_v24 }
 0x3ec   : > { %v2892_v0 = vpop.xlane.xlu0 %2891 }
 0x3ed   : > { %v2893_v34 = vsub.f32 %v2881_v43, %v2892_v0 }
 0x3ef   : > { %v2894_v36 = vmul.f32 1.442695, %v2893_v34 }
 0x3f1   : > { %3813 = vpow2.f32 %v2894_v36 }
 0x3fb   : > { %v3814_v14 = vpop.eup %3813 }
 0x3fc   : > { %v2896_v46 = vsel %vm2888_vm11, %v3814_v14, 0.0 }
 0x3fd   : > { %v2897_v51 = vsel %vm6294_vm1, %v2896_v46, 0.0 }
 0x3fe   : > { %2898 = vadd.xlane.f32.xlu1 %v2897_v51 }
 0x48b   : > { %v2899_v1 = vpop.xlane.xlu1 %2898 }
 0x48c   : > { %3815 = vrcp.f32 %v2899_v1 }
 0x496   : > { %v3816_v60 = vpop.eup %3815 }
 0x497   : > { %v2901_v13 = vmul.f32 %v3816_v60, %v2896_v46 }
 0x499   : > { %2903 = vst [vmem:[%s276_s9] sm:$0x1] %v2901_v13 }
 0x49a   : > { %3831 = shalt.err (!%p3828_p3)
}
 0x49b   : > { %s3832_s17 = scalar_lea.hbm %s5802_s21, 16  ;;  %s3836_s13 = scalar_lea.hbm %s5851_s7, 32 }
 0x49c   : > { %p3833_p4 = scmp.ne.s32.totalorder %s5802_s21, %s3832_s17  ;;  %p3837_p9 = scmp.lt.u32.totalorder %s5802_s21, %s5851_s7 }
 0x49d   : > { %p3838_p10 = scmp.lt.u32.totalorder %s3836_s13, %s3832_s17  ;;  %p3840_p12 = scmp.lt.u32.totalorder %s3832_s17, %s5802_s21 }
 0x49e   : > { %p3834_p7 = pnand %p3833_p4, %p3971_p5 }
 0x49f   : > { %p3839_p11 = por %p3838_p10, %p3837_p9 }
 0x4a0   : > { %p3835_p8 = pneg %p3834_p7 }
 0x4a1   : > { %p3841_p13 = por %p3840_p12, %p3839_p11 }
 0x4a3   : > { %p3842_p0 = pnand %p3841_p13, %p3835_p8 }
 0x4a5   : > { %3845 = shalt.err (!%p3842_p0)
}
 0x4a6   : > { %3123 = dma.vmem_to_hbm [thread:$0]  (%p3971_p5), %s5804_s14, 16, %s5802_s21, %s2908_s22  }
 0x4a7 PF: > { %p3129_p1 = scmp.ge.s32.totalorder %s3880_s27, 2  ;;  %s2941_s19 = sand.u32 1, %s3868_s24  }
 0x4a8   : > { %s2942_s20 = scalar_lea.sflag [#allocation3], %s2941_s19 }
 0x4a9   : > { %p3126_p2 = pnand %p3129_p1, %p3975_p6 }
 0x4ab   : > { %3863 = dma.done.wait (!%p3126_p2), %s2942_s20, 16  }
 0x4ac   : > { %3865 = vsyncadd (!%p3126_p2), %s2942_s20, 4294967280  ;;  %p18_p3 = scmp.ge.s32.totalorder %s3958_s30, 4   ;;  %s6295_s24 = smov %s3872_s25 }
 0x4ad   : > { %s6296_s25 = smov %s3876_s26  ;;  %s6297_s26 = smov %s3969_s10 }
 0x4ae   : > { %s6298_s27 = smov %s3958_s30  ;;  %20 = sbr.rel (!%p18_p3) target bundleno = 3 (0x3), region = 91 }
 0x4b5   :  { %2946 = vsyncpa [#allocation3], 1 }
 0x4b6   :  { %2948 = vsyncpa [#allocation3 + $0x1], 1 }

</bundles_post_ra>
